<compile_context>
chip_gen: v6e
topology: v6e:2x2x1
jax: 0.10.0
libtpu: 0.0.40
codegen_flags: <defaults>
</compile_context>

<pallas_src>
import functools

import jax
import jax.numpy as jnp
from jax import lax
from jax.experimental import pallas as pl
from jax.experimental.pallas import tpu as pltpu


def _soft_full_attn_kernel(src_ref, tgt_ref, pos_ref, mask_ref, w_ref, b_ref,
                           out_ref, *, compute_dtype):
    """One grid step = one batch element, both branches.

    src_ref, tgt_ref : (1, C, HW)   NCHW inputs with H*W flattened (lane-dense)
    pos_ref          : (2, 1, HW)   per-branch per-pixel positional bias
    mask_ref         : (2, HW, HW)  bf16 0/1 masks: branch 0 = same row,
                                    branch 1 = same column pixel pairs
    w_ref            : (4, C, C)    [w1_h, w2_h, w1_v, w2_v]
    b_ref            : (4, C, 1)    matching conv biases
    out_ref          : (1, 2C, HW)  rows [0:C) horizontal, [C:2C) vertical
    """
    C = src_ref.shape[1]

    src = src_ref[0]                                   # (C, HW) f32
    tgt = tgt_ref[0]                                   # (C, HW) f32
    tgt_cd = tgt.astype(compute_dtype)

    for r in range(2):                                 # 0 = horizontal, 1 = vertical
        pos = pos_ref[r]                               # (1, HW) f32
        w1 = w_ref[2 * r].astype(compute_dtype)        # (C, C)
        w2 = w_ref[2 * r + 1].astype(compute_dtype)
        b1 = b_ref[2 * r]                              # (C, 1) f32
        b2 = b_ref[2 * r + 1]

        # 1x1 convs on the bias-shifted inputs: two small MXU matmuls,
        # f32 accumulation, f32 bias add.
        s_in = (src + pos).astype(compute_dtype)       # (C, HW)
        t_in = (tgt + pos).astype(compute_dtype)
        s1 = jnp.dot(w1, s_in, preferred_element_type=jnp.float32) + b1   # (C, HW)
        t1 = jnp.dot(w2, t_in, preferred_element_type=jnp.float32) + b2   # (C, HW)

        # scores[q, p] = sum_c t1[c, q] * s1[c, p]: contract dim 0 of both
        # operands directly — no explicit (HW, C) transpose materialized.
        scores = lax.dot_general(
            t1.astype(compute_dtype), s1.astype(compute_dtype),
            dimension_numbers=(((0,), (0,)), ((), ())),
            preferred_element_type=jnp.float32)                           # (HW, HW)

        # Restrict to same-row / same-column pairs (precomputed 0/1 mask):
        # one vmul per vreg; masked entries are exact zeros so the full-HW
        # value contraction below is exact.
        scores = scores * mask_ref[r].astype(jnp.float32)

        # out[c, p] = sum_q target[c, q] * scores[q, p]
        out = jnp.dot(tgt_cd, scores.astype(compute_dtype),
                      preferred_element_type=jnp.float32)                 # (C, HW)

        out_ref[0, r * C:(r + 1) * C, :] = out.astype(out_ref.dtype)


@functools.partial(jax.jit, static_argnames=("compute_dtype",))
def _soft_full_attention_fwd(source, target, pos_stk, mask_stk, w_stk, b_stk,
                             compute_dtype=jnp.bfloat16):
    """source/target: (B, C, H, W) float32 -> (B, 2C, H, W) float32."""
    B, C, H, W = source.shape
    HW = H * W
    src = source.reshape(B, C, HW)      # free reshape (same memory layout)
    tgt = target.reshape(B, C, HW)

    out = pl.pallas_call(
        functools.partial(_soft_full_attn_kernel, compute_dtype=compute_dtype),
        out_shape=jax.ShapeDtypeStruct((B, 2 * C, HW), jnp.float32),
        grid=(B,),
        in_specs=[
            pl.BlockSpec((1, C, HW), lambda b: (b, 0, 0)),       # source
            pl.BlockSpec((1, C, HW), lambda b: (b, 0, 0)),       # target
            pl.BlockSpec((2, 1, HW), lambda b: (0, 0, 0)),       # pos bias (resident)
            pl.BlockSpec((2, HW, HW), lambda b: (0, 0, 0)),      # masks (resident)
            pl.BlockSpec((4, C, C), lambda b: (0, 0, 0)),        # conv weights
            pl.BlockSpec((4, C, 1), lambda b: (0, 0, 0)),        # conv biases
        ],
        out_specs=pl.BlockSpec((1, 2 * C, HW), lambda b: (b, 0, 0)),
        compiler_params=pltpu.CompilerParams(
            dimension_semantics=("parallel",)),
    )(src, tgt, pos_stk, mask_stk, w_stk, b_stk)

    # (B, 2C, HW) -> (B, 2C, H, W): free reshape; channel order already
    # matches torch.cat([horizontal, vertical], 1).
    return out.reshape(B, 2 * C, H, W)


class SoftFullAttentionPallas:
    """Deterministically-initialized JAX/Pallas re-implementation of SoftFullAttention."""

    def __init__(self, inchannels, h, w, key):
        C = inchannels
        self.C, self.H, self.W = C, h, w
        ks = jax.random.split(key, 10)
        bound = 1.0 / (inchannels ** 0.5)

        # nn.Parameter(torch.rand(h, w)) / (w, h): uniform [0, 1)
        self.P_v = jax.random.uniform(ks[0], (h, w), jnp.float32)
        self.P_h = jax.random.uniform(ks[1], (w, h), jnp.float32)

        def conv_init(kw, kb):
            # Conv2d(C, C, (1,1)): weight stored as (C_out, C_in), bias (C,)
            W_ = jax.random.uniform(kw, (C, C), jnp.float32, -bound, bound)
            b_ = jax.random.uniform(kb, (C,), jnp.float32, -bound, bound)
            return W_, b_

        self.w1v, self.b1v = conv_init(ks[2], ks[3])    # c1_v
        self.w2v, self.b2v = conv_init(ks[4], ks[5])    # c2_v
        self.w1h, self.b1h = conv_init(ks[6], ks[7])    # c1_h
        self.w2h, self.b2h = conv_init(ks[8], ks[9])    # c2_h

        # ---- kernel-layout operands (tiny, built once on the host) ----
        HW = h * w
        # branch 0 = horizontal, branch 1 = vertical
        self.w_stk = jnp.stack([self.w1h, self.w2h, self.w1v, self.w2v])      # (4, C, C)
        self.b_stk = jnp.stack([b.reshape(C, 1) for b in
                                (self.b1h, self.b2h, self.b1v, self.b2v)])    # (4, C, 1)
        # positional bias at flattened pixel p = i*W + j:
        #   horizontal branch adds P_h[j, i], vertical branch adds P_v[i, j]
        self.pos_stk = jnp.stack([self.P_h.T.reshape(1, HW),
                                  self.P_v.reshape(1, HW)])                   # (2, 1, HW)
        # Precomputed same-row / same-column pixel-pair masks (0/1, exact in bf16).
        pix = jnp.arange(HW)
        row = pix // w
        col = pix % w
        self.mask_stk = jnp.stack([
            row[:, None] == row[None, :],          # horizontal: same image row
            col[:, None] == col[None, :],          # vertical:   same image column
        ]).astype(jnp.bfloat16)                                               # (2, HW, HW)

    def __call__(self, source, target, compute_dtype=jnp.bfloat16):
        return _soft_full_attention_fwd(source, target, self.pos_stk,
                                        self.mask_stk, self.w_stk, self.b_stk,
                                        compute_dtype=compute_dtype)


def _reference(mod, source, target):
    """Pure-JAX mirror of the PyTorch forward (HIGHEST precision matmuls)."""
    hp = jax.lax.Precision.HIGHEST

    def conv(x, W, b):  # x: (B, C, H', W')
        return jnp.einsum('bchw,oc->bohw', x, W, precision=hp) + b[None, :, None, None]

    # vertical
    s1 = conv(source + mod.P_v, mod.w1v, mod.b1v)
    t1 = conv(target + mod.P_v, mod.w2v, mod.b2v)
    s1 = jnp.swapaxes(s1, 1, 3)                       # (B, W, H, C)
    t1 = jnp.swapaxes(jnp.swapaxes(t1, 1, 3), 2, 3)   # (B, W, C, H)
    res1 = jnp.matmul(s1, t1, precision=hp)           # (B, W, H, H)
    res2 = jnp.swapaxes(target, 1, 3)                 # (B, W, H, C)
    vert = jnp.swapaxes(jnp.matmul(res1, res2, precision=hp), 1, 3)

    # horizontal
    s1h = conv(jnp.swapaxes(source, 2, 3) + mod.P_h, mod.w1h, mod.b1h)
    t1h = conv(jnp.swapaxes(target, 2, 3) + mod.P_h, mod.w2h, mod.b2h)
    s1h = jnp.swapaxes(s1h, 1, 3)
    t1h = jnp.swapaxes(jnp.swapaxes(t1h, 1, 3), 2, 3)
    res1h = jnp.matmul(s1h, t1h, precision=hp)
    res2h = jnp.swapaxes(jnp.swapaxes(target, 2, 3), 1, 3)
    horz = jnp.swapaxes(jnp.swapaxes(jnp.matmul(res1h, res2h, precision=hp), 1, 3), 2, 3)

    return jnp.concatenate([horz, vert], axis=1)


if __name__ == "__main__":
    B, C, H, W = 2, 4, 16, 16
    key = jax.random.PRNGKey(0)
    k_mod, k_src, k_tgt = jax.random.split(key, 3)

    mod = SoftFullAttentionPallas(C, H, W, k_mod)
    source = jax.random.normal(k_src, (B, C, H, W), jnp.float32)
    target = jax.random.normal(k_tgt, (B, C, H, W), jnp.float32)

    out = jax.block_until_ready(mod(source, target))
    assert out.shape == (B, 2 * C, H, W), out.shape

    ref = jax.block_until_ready(_reference(mod, source, target))
    scale = float(jnp.max(jnp.abs(ref)))
    max_err = float(jnp.max(jnp.abs(out - ref)))
    # bf16 MXU operands with f32 accumulation across a 3-matmul chain: expected
    # worst-case error is a few * 2^-9 of the output scale.  An indexing / mask
    # bug would produce O(scale) errors, so this threshold still catches logic
    # errors while tolerating bf16 rounding.  (For a tight ~1e-5 check, call
    # mod(source, target, compute_dtype=jnp.float32).)
    assert max_err <= 2e-2 * max(scale, 1.0), (max_err, scale)

    print("KERNEL_OK")
</pallas_src>

<mosaic_0001>
module attributes {stable_mosaic.version = 11 : i64} {
  func.func @_soft_full_attn_kernel(%arg0: i32, %arg1: memref<1x4x256xf32, #tpu.memory_space<vmem>>, %arg2: memref<1x4x256xf32, #tpu.memory_space<vmem>>, %arg3: memref<2x1x256xf32, #tpu.memory_space<vmem>>, %arg4: memref<2x256x256xbf16, #tpu.memory_space<vmem>>, %arg5: memref<4x4x4xf32, #tpu.memory_space<vmem>>, %arg6: memref<4x4x1xf32, #tpu.memory_space<vmem>>, %arg7: memref<1x8x256xf32, #tpu.memory_space<vmem>>) attributes {dimension_semantics = [#tpu.dimension_semantics<parallel>], iteration_bounds = array<i64: 2>, scalar_prefetch = 0 : i64, scratch_operands = 0 : i64, tpu.core_type = #tpu.core_type<tc>, window_params = [{transform_indices = @transform_0, window_bounds = array<i64: 1, 4, 256>}, {transform_indices = @transform_1, window_bounds = array<i64: 1, 4, 256>}, {pipeline_mode = #tpu.pipeline_mode<synchronous>, transform_indices = @transform_2, window_bounds = array<i64: 2, 1, 256>}, {pipeline_mode = #tpu.pipeline_mode<synchronous>, transform_indices = @transform_3, window_bounds = array<i64: 2, 256, 256>}, {pipeline_mode = #tpu.pipeline_mode<synchronous>, transform_indices = @transform_4, window_bounds = array<i64: 4, 4, 4>}, {pipeline_mode = #tpu.pipeline_mode<synchronous>, transform_indices = @transform_5, window_bounds = array<i64: 4, 4, 1>}, {transform_indices = @transform_6, window_bounds = array<i64: 1, 8, 256>}]} {
    %c0 = arith.constant 0 : index
    %c0_0 = arith.constant 0 : index
    %c0_1 = arith.constant 0 : index
    %0 = vector.load %arg1[%c0, %c0_0, %c0_1] : memref<1x4x256xf32, #tpu.memory_space<vmem>>, vector<1x4x256xf32>
    %1 = vector.shape_cast %0 : vector<1x4x256xf32> to vector<4x256xf32>
    %c0_2 = arith.constant 0 : index
    %c0_3 = arith.constant 0 : index
    %c0_4 = arith.constant 0 : index
    %2 = vector.load %arg2[%c0_2, %c0_3, %c0_4] : memref<1x4x256xf32, #tpu.memory_space<vmem>>, vector<1x4x256xf32>
    %3 = vector.shape_cast %2 : vector<1x4x256xf32> to vector<4x256xf32>
    %4 = arith.truncf %3 : vector<4x256xf32> to vector<4x256xbf16>
    %c0_5 = arith.constant 0 : index
    %c0_6 = arith.constant 0 : index
    %c0_7 = arith.constant 0 : index
    %5 = vector.load %arg3[%c0_5, %c0_6, %c0_7] : memref<2x1x256xf32, #tpu.memory_space<vmem>>, vector<1x1x256xf32>
    %6 = vector.shape_cast %5 : vector<1x1x256xf32> to vector<1x256xf32>
    %c0_8 = arith.constant 0 : index
    %c0_9 = arith.constant 0 : index
    %c0_10 = arith.constant 0 : index
    %7 = vector.load %arg5[%c0_8, %c0_9, %c0_10] : memref<4x4x4xf32, #tpu.memory_space<vmem>>, vector<1x4x4xf32>
    %8 = vector.shape_cast %7 : vector<1x4x4xf32> to vector<4x4xf32>
    %9 = arith.truncf %8 : vector<4x4xf32> to vector<4x4xbf16>
    %c1 = arith.constant 1 : index
    %c0_11 = arith.constant 0 : index
    %c0_12 = arith.constant 0 : index
    %10 = vector.load %arg5[%c1, %c0_11, %c0_12] : memref<4x4x4xf32, #tpu.memory_space<vmem>>, vector<1x4x4xf32>
    %11 = vector.shape_cast %10 : vector<1x4x4xf32> to vector<4x4xf32>
    %12 = arith.truncf %11 : vector<4x4xf32> to vector<4x4xbf16>
    %c0_13 = arith.constant 0 : index
    %c0_14 = arith.constant 0 : index
    %c0_15 = arith.constant 0 : index
    %13 = vector.load %arg6[%c0_13, %c0_14, %c0_15] : memref<4x4x1xf32, #tpu.memory_space<vmem>>, vector<1x4x1xf32>
    %14 = vector.shape_cast %13 : vector<1x4x1xf32> to vector<4x1xf32>
    %c1_16 = arith.constant 1 : index
    %c0_17 = arith.constant 0 : index
    %c0_18 = arith.constant 0 : index
    %15 = vector.load %arg6[%c1_16, %c0_17, %c0_18] : memref<4x4x1xf32, #tpu.memory_space<vmem>>, vector<1x4x1xf32>
    %16 = vector.shape_cast %15 : vector<1x4x1xf32> to vector<4x1xf32>
    %17 = vector.broadcast %6 : vector<1x256xf32> to vector<4x256xf32>
    %18 = arith.addf %1, %17 : vector<4x256xf32>
    %19 = arith.truncf %18 : vector<4x256xf32> to vector<4x256xbf16>
    %20 = vector.broadcast %6 : vector<1x256xf32> to vector<4x256xf32>
    %21 = arith.addf %3, %20 : vector<4x256xf32>
    %22 = arith.truncf %21 : vector<4x256xf32> to vector<4x256xbf16>
    %cst = arith.constant dense<0.000000e+00> : vector<4x256xf32>
    %23 = tpu.matmul %9, %19, %cst {dimension_numbers = #tpu.dot_dimension_numbers<[1], [0], [0], [1], [0, 0, 1, 1], [], []>} : vector<4x4xbf16>, vector<4x256xbf16>, vector<4x256xf32> -> vector<4x256xf32>
    %24 = vector.broadcast %14 : vector<4x1xf32> to vector<4x256xf32>
    %25 = arith.addf %23, %24 : vector<4x256xf32>
    %cst_19 = arith.constant dense<0.000000e+00> : vector<4x256xf32>
    %26 = tpu.matmul %12, %22, %cst_19 {dimension_numbers = #tpu.dot_dimension_numbers<[1], [0], [0], [1], [0, 0, 1, 1], [], []>} : vector<4x4xbf16>, vector<4x256xbf16>, vector<4x256xf32> -> vector<4x256xf32>
    %27 = vector.broadcast %16 : vector<4x1xf32> to vector<4x256xf32>
    %28 = arith.addf %26, %27 : vector<4x256xf32>
    %29 = arith.truncf %28 : vector<4x256xf32> to vector<4x256xbf16>
    %30 = arith.truncf %25 : vector<4x256xf32> to vector<4x256xbf16>
    %cst_20 = arith.constant dense<0.000000e+00> : vector<256x256xf32>
    %31 = tpu.matmul %29, %30, %cst_20 {dimension_numbers = #tpu.dot_dimension_numbers<[0], [0], [1], [1], [0, 1, 1, 1], [], []>} : vector<4x256xbf16>, vector<4x256xbf16>, vector<256x256xf32> -> vector<256x256xf32>
    %c0_21 = arith.constant 0 : index
    %c0_22 = arith.constant 0 : index
    %c0_23 = arith.constant 0 : index
    %32 = vector.load %arg4[%c0_21, %c0_22, %c0_23] : memref<2x256x256xbf16, #tpu.memory_space<vmem>>, vector<1x256x256xbf16>
    %33 = vector.shape_cast %32 : vector<1x256x256xbf16> to vector<256x256xbf16>
    %34 = arith.extf %33 : vector<256x256xbf16> to vector<256x256xf32>
    %35 = arith.mulf %31, %34 : vector<256x256xf32>
    %36 = arith.truncf %35 : vector<256x256xf32> to vector<256x256xbf16>
    %cst_24 = arith.constant dense<0.000000e+00> : vector<4x256xf32>
    %37 = tpu.matmul %4, %36, %cst_24 {dimension_numbers = #tpu.dot_dimension_numbers<[1], [0], [0], [1], [0, 0, 1, 1], [], []>} : vector<4x256xbf16>, vector<256x256xbf16>, vector<4x256xf32> -> vector<4x256xf32>
    %c0_25 = arith.constant 0 : index
    %c0_26 = arith.constant 0 : index
    %c0_27 = arith.constant 0 : index
    %38 = vector.load %arg7[%c0_25, %c0_26, %c0_27] : memref<1x8x256xf32, #tpu.memory_space<vmem>>, vector<1x4x256xf32>
    %39 = vector.shape_cast %38 : vector<1x4x256xf32> to vector<4x256xf32>
    %40 = vector.shape_cast %37 : vector<4x256xf32> to vector<1x4x256xf32>
    tpu.vector_store %arg7[%c0_25, %c0_26, %c0_27], %40 {strides = array<i32>} : memref<1x8x256xf32, #tpu.memory_space<vmem>>, vector<1x4x256xf32>,
    %c1_28 = arith.constant 1 : index
    %c0_29 = arith.constant 0 : index
    %c0_30 = arith.constant 0 : index
    %41 = vector.load %arg3[%c1_28, %c0_29, %c0_30] : memref<2x1x256xf32, #tpu.memory_space<vmem>>, vector<1x1x256xf32>
    %42 = vector.shape_cast %41 : vector<1x1x256xf32> to vector<1x256xf32>
    %c2 = arith.constant 2 : index
    %c0_31 = arith.constant 0 : index
    %c0_32 = arith.constant 0 : index
    %43 = vector.load %arg5[%c2, %c0_31, %c0_32] : memref<4x4x4xf32, #tpu.memory_space<vmem>>, vector<1x4x4xf32>
    %44 = vector.shape_cast %43 : vector<1x4x4xf32> to vector<4x4xf32>
    %45 = arith.truncf %44 : vector<4x4xf32> to vector<4x4xbf16>
    %c3 = arith.constant 3 : index
    %c0_33 = arith.constant 0 : index
    %c0_34 = arith.constant 0 : index
    %46 = vector.load %arg5[%c3, %c0_33, %c0_34] : memref<4x4x4xf32, #tpu.memory_space<vmem>>, vector<1x4x4xf32>
    %47 = vector.shape_cast %46 : vector<1x4x4xf32> to vector<4x4xf32>
    %48 = arith.truncf %47 : vector<4x4xf32> to vector<4x4xbf16>
    %c2_35 = arith.constant 2 : index
    %c0_36 = arith.constant 0 : index
    %c0_37 = arith.constant 0 : index
    %49 = vector.load %arg6[%c2_35, %c0_36, %c0_37] : memref<4x4x1xf32, #tpu.memory_space<vmem>>, vector<1x4x1xf32>
    %50 = vector.shape_cast %49 : vector<1x4x1xf32> to vector<4x1xf32>
    %c3_38 = arith.constant 3 : index
    %c0_39 = arith.constant 0 : index
    %c0_40 = arith.constant 0 : index
    %51 = vector.load %arg6[%c3_38, %c0_39, %c0_40] : memref<4x4x1xf32, #tpu.memory_space<vmem>>, vector<1x4x1xf32>
    %52 = vector.shape_cast %51 : vector<1x4x1xf32> to vector<4x1xf32>
    %53 = vector.broadcast %42 : vector<1x256xf32> to vector<4x256xf32>
    %54 = arith.addf %1, %53 : vector<4x256xf32>
    %55 = arith.truncf %54 : vector<4x256xf32> to vector<4x256xbf16>
    %56 = vector.broadcast %42 : vector<1x256xf32> to vector<4x256xf32>
    %57 = arith.addf %3, %56 : vector<4x256xf32>
    %58 = arith.truncf %57 : vector<4x256xf32> to vector<4x256xbf16>
    %cst_41 = arith.constant dense<0.000000e+00> : vector<4x256xf32>
    %59 = tpu.matmul %45, %55, %cst_41 {dimension_numbers = #tpu.dot_dimension_numbers<[1], [0], [0], [1], [0, 0, 1, 1], [], []>} : vector<4x4xbf16>, vector<4x256xbf16>, vector<4x256xf32> -> vector<4x256xf32>
    %60 = vector.broadcast %50 : vector<4x1xf32> to vector<4x256xf32>
    %61 = arith.addf %59, %60 : vector<4x256xf32>
    %cst_42 = arith.constant dense<0.000000e+00> : vector<4x256xf32>
    %62 = tpu.matmul %48, %58, %cst_42 {dimension_numbers = #tpu.dot_dimension_numbers<[1], [0], [0], [1], [0, 0, 1, 1], [], []>} : vector<4x4xbf16>, vector<4x256xbf16>, vector<4x256xf32> -> vector<4x256xf32>
    %63 = vector.broadcast %52 : vector<4x1xf32> to vector<4x256xf32>
    %64 = arith.addf %62, %63 : vector<4x256xf32>
    %65 = arith.truncf %64 : vector<4x256xf32> to vector<4x256xbf16>
    %66 = arith.truncf %61 : vector<4x256xf32> to vector<4x256xbf16>
    %cst_43 = arith.constant dense<0.000000e+00> : vector<256x256xf32>
    %67 = tpu.matmul %65, %66, %cst_43 {dimension_numbers = #tpu.dot_dimension_numbers<[0], [0], [1], [1], [0, 1, 1, 1], [], []>} : vector<4x256xbf16>, vector<4x256xbf16>, vector<256x256xf32> -> vector<256x256xf32>
    %c1_44 = arith.constant 1 : index
    %c0_45 = arith.constant 0 : index
    %c0_46 = arith.constant 0 : index
    %68 = vector.load %arg4[%c1_44, %c0_45, %c0_46] : memref<2x256x256xbf16, #tpu.memory_space<vmem>>, vector<1x256x256xbf16>
    %69 = vector.shape_cast %68 : vector<1x256x256xbf16> to vector<256x256xbf16>
    %70 = arith.extf %69 : vector<256x256xbf16> to vector<256x256xf32>
    %71 = arith.mulf %67, %70 : vector<256x256xf32>
    %72 = arith.truncf %71 : vector<256x256xf32> to vector<256x256xbf16>
    %cst_47 = arith.constant dense<0.000000e+00> : vector<4x256xf32>
    %73 = tpu.matmul %4, %72, %cst_47 {dimension_numbers = #tpu.dot_dimension_numbers<[1], [0], [0], [1], [0, 0, 1, 1], [], []>} : vector<4x256xbf16>, vector<256x256xbf16>, vector<4x256xf32> -> vector<4x256xf32>
    %c0_48 = arith.constant 0 : index
    %c4 = arith.constant 4 : index
    %c0_49 = arith.constant 0 : index
    %74 = vector.load %arg7[%c0_48, %c4, %c0_49] : memref<1x8x256xf32, #tpu.memory_space<vmem>>, vector<1x4x256xf32>
    %75 = vector.shape_cast %74 : vector<1x4x256xf32> to vector<4x256xf32>
    %76 = vector.shape_cast %73 : vector<4x256xf32> to vector<1x4x256xf32>
    tpu.vector_store %arg7[%c0_48, %c4, %c0_49], %76 {strides = array<i32>} : memref<1x8x256xf32, #tpu.memory_space<vmem>>, vector<1x4x256xf32>,
    return
  }
  func.func @transform_0(%arg0: i32) -> (i32, i32, i32) {
    %c0_i32 = arith.constant 0 : i32
    %c0_i32_0 = arith.constant 0 : i32
    %c0_i32_1 = arith.constant 0 : i32
    return %arg0, %c0_i32, %c0_i32_0 : i32, i32, i32
  }
  func.func @transform_1(%arg0: i32) -> (i32, i32, i32) {
    %c0_i32 = arith.constant 0 : i32
    %c0_i32_0 = arith.constant 0 : i32
    %c0_i32_1 = arith.constant 0 : i32
    return %arg0, %c0_i32, %c0_i32_0 : i32, i32, i32
  }
  func.func @transform_2(%arg0: i32) -> (i32, i32, i32) {
    %c0_i32 = arith.constant 0 : i32
    %c0_i32_0 = arith.constant 0 : i32
    %c0_i32_1 = arith.constant 0 : i32
    %c0_i32_2 = arith.constant 0 : i32
    return %c0_i32, %c0_i32_0, %c0_i32_1 : i32, i32, i32
  }
  func.func @transform_3(%arg0: i32) -> (i32, i32, i32) {
    %c0_i32 = arith.constant 0 : i32
    %c0_i32_0 = arith.constant 0 : i32
    %c0_i32_1 = arith.constant 0 : i32
    %c0_i32_2 = arith.constant 0 : i32
    return %c0_i32, %c0_i32_0, %c0_i32_1 : i32, i32, i32
  }
  func.func @transform_4(%arg0: i32) -> (i32, i32, i32) {
    %c0_i32 = arith.constant 0 : i32
    %c0_i32_0 = arith.constant 0 : i32
    %c0_i32_1 = arith.constant 0 : i32
    %c0_i32_2 = arith.constant 0 : i32
    return %c0_i32, %c0_i32_0, %c0_i32_1 : i32, i32, i32
  }
  func.func @transform_5(%arg0: i32) -> (i32, i32, i32) {
    %c0_i32 = arith.constant 0 : i32
    %c0_i32_0 = arith.constant 0 : i32
    %c0_i32_1 = arith.constant 0 : i32
    %c0_i32_2 = arith.constant 0 : i32
    return %c0_i32, %c0_i32_0, %c0_i32_1 : i32, i32, i32
  }
  func.func @transform_6(%arg0: i32) -> (i32, i32, i32) {
    %c0_i32 = arith.constant 0 : i32
    %c0_i32_0 = arith.constant 0 : i32
    %c0_i32_1 = arith.constant 0 : i32
    return %arg0, %c0_i32, %c0_i32_0 : i32, i32, i32
  }
}

</mosaic_0001>

<bundles_post_ra>
// kernel: _soft_full_attention_fwd.1
= control target key start
LH: loop header
LB: loop body
LE: loop exit
PB: predicated region body
PF: predicated region fallthrough
CT: control target
= control target key end

     0   :  { %11 = vsyncpa [#allocation3], 0  ;;  %s1876_s21 = smov 0   ;;  %s2781_s0 = inlined_call_operand.vmem [shape: f32[2,4,256], index: 0, kind: input, shape index: {}]   ;;  %s2782_s1 = inlined_call_operand.vmem [shape: f32[2,4,256], index: 1, kind: input, shape index: {}]   ;;  %s2783_s2 = inlined_call_operand.vmem [shape: f32[2,1,256], index: 2, kind: input, shape index: {}]   ;;  %s2784_s3 = inlined_call_operand.hbm [shape: bf16[2,256,256], index: 3, kind: input, shape index: {}]   ;;  %s2785_s4 = inlined_call_operand.vmem [shape: f32[4,4,4], index: 4, kind: input, shape index: {}]   ;;  %s2786_s5 = inlined_call_operand.vmem [shape: f32[4,4,1], index: 5, kind: input, shape index: {}]   ;;  %s2787_s6 = inlined_call_operand.vmem [shape: f32[2,8,256], index: 6, kind: output, shape index: {}]  }
   0x1 LB: > { %s1882_s22 = sadd.s32 4294967295, %s1835_s21   ;;  %p1708_p0 = scmp.ge.s32.totalorder %s1835_s21, 1  ;;  %s1835_s21 = sphi %s1876_s21, %s17_s21  }
   0x2   : > { %p184_p1 = scmp.lt.s32.totalorder %s1835_s21, 3  ;;  %s1837_s23 = smov [#allocation2]  }
   0x3   : > { %s199_s24 = sshll.u32 %s1837_s23, 4  ;;  %p1781_p3 = scmp.eq.s32.totalorder %s1882_s22, 0  ;;  %s200_s24 = int_to_ptr.vmem [resolvable:$true] %s199_s24 }
   0x4   : > { %p1886_p2 = pnand %p1708_p0, %p184_p1  ;;  %s1810_s26 = scalar_lea.vmem %s200_s24, 8192 }
   0x5   : > { %p1811_p7 = scmp.ne.s32.totalorder %s200_s24, %s1810_s26  ;;  %p1818_p10 = scmp.lt.s32.totalorder %s200_s24, %s200_s24 }
   0x6   : > { %p1777_p4 = pneg %p1886_p2  ;;  %p1819_p11 = scmp.lt.s32.totalorder %s1810_s26, %s1810_s26 }
   0x8   : > { %p1778_p5 = pnand %p1781_p3, %p1777_p4  ;;  %p1820_p12 = por %p1819_p11, %p1818_p10 }
   0xa   : > { %p1801_p6 = pneg %p1778_p5 }
   0xc   : > { %p1813_p8 = pnand %p1811_p7, %p1801_p6 }
   0xe   : > { %p1814_p9 = pneg %p1813_p8 }
  0x10   : > { %p1821_p13 = pnand %p1820_p12, %p1814_p9 }
  0x12   : > { %1824 = shalt.err (!%p1821_p13)
}
  0x13   : > { %s1838_s27 = smov 128   ;;  %s1839_s28 = smov 8  }
  0x14   : > { %1780 = dma.hbm_to_vmem [thread:$0]  (!%p1778_p5), %s2784_s3, 8192, %s200_s24, [#allocation3], %s1838_s27, %s1838_s27, %s1839_s28  }
  0x15   : > { %237 = sbr.rel (%p1886_p2) target bundleno = 906 (0x38a), region = 44 }
  0x1a   : > { %1830 = dma.done.wait (%p1781_p3), [#allocation3], 8192  }
  0x1b   : > { %1832 = vsyncadd (%p1781_p3), [#allocation3], 4294959104  ;;  %p272_p0 = scmp.lt.s32.totalorder %s1882_s22, 1  ;;  %v305_v0 = vlaneseq  ;;  %v1840_v1 = vmov 0   ;;  %v295_v5 = vld [vmem:[%s2783_s2] sm:$0x3] }
  0x1c   : > { %375 = vmatprep.mubr.bf16.mxu0 %v1840_v1  ;;  %1038 = vmatprep.mubr.bf16.mxu1 %v1840_v1  ;;  %v1742_v8 = vld [vmem:[%s2783_s2 + $0x2] sm:$0x3]  ;;  %v1720_v15 = vld [vmem:[%s2786_s5 + $0x4] sm:$0xf]  ;;  %v1745_v17 = vld [vmem:[%s2786_s5 + $0x8] sm:$0xf] }
  0x1d   : > { %s3134_s22 = smov (!%p272_p0, %s1882_s22), 1  ;;  %v306_v2 = vshrl.u32 %v305_v0, 7  ;;  %1796 = vset.pattern.permute.xlu1 %v1840_v1  ;;  %1795 = vset.pattern.permute.xlu0 %v1840_v1  ;;  %v301_v13 = vld [vmem:[%s2786_s5] sm:$0xf]  ;;  %v1746_v20 = vld [vmem:[%s2786_s5 + $0xc] sm:$0xf] }
  0x1e   : > { %s1770_s7 = sshll.u32 %s3134_s22, 3  ;;  %329 = vperm.xlu1 %1796, %v301_v13   ;;  %386 = vperm.xlu0 %1795, %v1720_v15   ;;  %vm336_vm0 = vcmask 1041408   ;;  %v296_v28 = vld [vmem:[%s2785_s4] sm:$0xf]  ;;  %v1743_v32 = vld [vmem:[%s2785_s4 + $0x8] sm:$0xf] }
  0x1f   : > { %v307_v3 = vsub.s32 0, %v306_v2  ;;  %v311_v4 = vsub.s32 1, %v306_v2  ;;  %s276_s10 = scalar_lea.vmem %s2781_s0, %s1770_s7  ;;  %s1919_s13 = scalar_lea.vmem %s2782_s1, %s1770_s7  ;;  %v297_v39 = vpack.c.bf16 %v296_v28, %v296_v28  ;;  %vm332_vm1 = vcmask 31744   ;;  %v1719_v43 = vld [vmem:[%s2785_s4 + $0x4] sm:$0xf] }
  0x20   : > { %v288_v9 = vld [vmem:[%s276_s10] sm:$0xff]  ;;  %v961_v40 = vpack.c.bf16 %v1743_v32, %v1743_v32  ;;  %v1744_v44 = vld [vmem:[%s2785_s4 + $0xc] sm:$0xf]  ;;  %v300_v45 = vpack.c.bf16 %v1719_v43, %v1719_v43  ;;  %s1772_s12 = sshll.u32 %s3134_s22, 4 }
  0x21   : > { %v308_v6 = vrot.slane %v295_v5, %v307_v3  ;;  %v312_v7 = vrot.slane %v295_v5, %v311_v4  ;;  %v1928_v10 = vld [vmem:[%s1919_s13] sm:$0xff]  ;;  %v973_v11 = vrot.slane %v1742_v8, %v307_v3  ;;  %v977_v12 = vrot.slane %v1742_v8, %v311_v4  ;;  %s286_s16 = scalar_lea.vmem %s2787_s6, %s1772_s12 }
  0x22   : > { %994 = vperm.xlu1 %1796, %v1745_v17   ;;  %1049 = vperm.xlu0 %1795, %v1746_v20   ;;  %v964_v46 = vpack.c.bf16 %v1744_v44, %v1744_v44 }
  0x23   : > { %v313_v14 = vcombine.low %v308_v6, %v312_v7  ;;  %v978_v16 = vcombine.low %v973_v11, %v977_v12 }
  0x25   : > { %v315_v18 = vadd.f32 %v313_v14, %v288_v9  ;;  %v321_v19 = vadd.f32 %v313_v14, %v1928_v10  ;;  %v980_v21 = vadd.f32 %v978_v16, %v288_v9  ;;  %v986_v22 = vadd.f32 %v978_v16, %v1928_v10 }
  0x27   : > { %v317_v23 = vcombine.high %v315_v18, %v315_v18  ;;  %v319_v24 = vpack.c.bf16 %v315_v18, %v315_v18  ;;  %v323_v25 = vcombine.high %v321_v19, %v321_v19  ;;  %v982_v26 = vcombine.high %v980_v21, %v980_v21 }
  0x28   : > { %v984_v27 = vpack.c.bf16 %v980_v21, %v980_v21  ;;  %v988_v29 = vcombine.high %v986_v22, %v986_v22  ;;  %v325_v34 = vpack.c.bf16 %v321_v19, %v321_v19  ;;  %v990_v38 = vpack.c.bf16 %v986_v22, %v986_v22 }
  0x29   : > { %v320_v30 = vpack.c.bf16 %v317_v23, %v317_v23  ;;  %v338_v31 = vsel %vm336_vm0, %v319_v24, 0  ;;  %v326_v33 = vpack.c.bf16 %v323_v25, %v323_v25  ;;  %v985_v35 = vpack.c.bf16 %v982_v26, %v982_v26 }
  0x2a   : > { %v1001_v36 = vsel %vm336_vm0, %v984_v27, 0  ;;  %v991_v37 = vpack.c.bf16 %v988_v29, %v988_v29  ;;  %v393_v41 = vsel %vm336_vm0, %v325_v34, 0  ;;  %v1056_v42 = vsel %vm336_vm0, %v990_v38, 0 }
  0x2b   : > { %1721 = vmatprep.subr.msk.bf16.mxu0 %vm336_vm0, %v320_v30  ;;  %1747 = vmatprep.subr.msk.bf16.mxu1 %vm336_vm0, %v985_v35 }
  0x2c   : > { %358 = vmatpush1.bf16.msra.mxu0 %v338_v31  ;;  %1021 = vmatpush1.bf16.msra.mxu1 %v1001_v36 }
  0x2d   : > { %1723 = vmatprep.subr.msk.bf16.mxu0 %vm336_vm0, %v326_v33  ;;  %1749 = vmatprep.subr.msk.bf16.mxu1 %vm336_vm0, %v991_v37 }
  0x2f   : > { %1722 = vmatmul.mubr.msk.bf16.vlgmr.msra.gmra.mxu0 %vm332_vm1, %v297_v39  ;;  %1748 = vmatmul.mubr.msk.bf16.vlgmr.msra.gmra.mxu1 %vm332_vm1, %v961_v40 }
  0x30   : > { %413 = vmatpush1.bf16.msra.mxu0 %v393_v41  ;;  %1076 = vmatpush1.bf16.msra.mxu1 %v1056_v42 }
  0x31   : > { %430 = vmatprep.mubr.bf16.mxu0 %v1840_v1  ;;  %1093 = vmatprep.mubr.bf16.mxu1 %v1840_v1 }
  0x37   : > { %1724 = vmatmul.mubr.msk.bf16.vlgmr.msra.gmra.mxu0 %vm332_vm1, %v300_v45  ;;  %1750 = vmatmul.mubr.msk.bf16.vlgmr.msra.gmra.mxu1 %vm332_vm1, %v964_v46 }
  0x38   : > { %561 = vmatprep.mubr.bf16.mxu0 %v1840_v1  ;;  %1224 = vmatprep.mubr.bf16.mxu1 %v1840_v1 }
  0x99   : > { %v330_v47 = vpop.permute.xlu1 %329  ;;  %v387_v54 = vpop.permute.xlu0 %386 }
  0x9d   : > { %v995_v48 = vpop.permute.xlu1 %994  ;;  %v1050_v6 = vpop.permute.xlu0 %1049 }
  0xef   : > { %v377_v49 = vpop.f32.mrf.mxu0  ;;  %v1040_v51 = vpop.f32.mrf.mxu1 }
  0xf0   : > { %v378_v50 = vadd.f32 %v377_v49, %v330_v47  ;;  %v1041_v52 = vadd.f32 %v1040_v51, %v995_v48 }
  0xf1   : > { %v379_v53 = vpop.f32.mrf.mxu0  ;;  %v1042_v57 = vpop.f32.mrf.mxu1 }
  0xf2   : > { %v441_v55 = vpack.c.bf16 %v378_v50, %v378_v50  ;;  %v380_v56 = vadd.f32 %v379_v53, %v330_v47  ;;  %v1104_v58 = vpack.c.bf16 %v1041_v52, %v1041_v52  ;;  %v1043_v59 = vadd.f32 %v1042_v57, %v995_v48  ;;  %v1386_v57 = vld [vmem:[#allocation2 + $0x100] sm:$0xff] }
  0xf3   : > { %v381_v60 = vpop.f32.mrf.mxu0  ;;  %v1044_v62 = vpop.f32.mrf.mxu1 }
  0xf4   : > { %v442_v61 = vpack.c.bf16 %v380_v56, %v380_v56  ;;  %v1105_v63 = vpack.c.bf16 %v1043_v59, %v1043_v59  ;;  %v524_v2 = vsel %vm336_vm0, %v441_v55, 0  ;;  %v1187_v4 = vsel %vm336_vm0, %v1104_v58, 0  ;;  %v722_v55 = vld [vmem:[#allocation2] sm:$0xff]  ;;  %v723_v56 = vld [vmem:[#allocation2 + $0x8] sm:$0xff] }
  0xf5   : > { %v382_v0 = vpop.f32.mrf.mxu0  ;;  %v1045_v3 = vpop.f32.mrf.mxu1  ;;  %v1387_v58 = vld [vmem:[#allocation2 + $0x108] sm:$0xff]  ;;  %v754_v60 = vunpack.c.l.bf16 %v722_v55  ;;  %v756_v62 = vunpack.c.l.bf16 %v723_v56 }
  0xf6   : > { %1725 = vmatprep.subr.msk.bf16.mxu0 %vm336_vm0, %v442_v61  ;;  %1751 = vmatprep.subr.msk.bf16.mxu1 %vm336_vm0, %v1105_v63  ;;  %v1418_v63 = vunpack.c.l.bf16 %v1386_v57  ;;  %v755_v3 = vunpack.c.h.bf16 %v722_v55  ;;  %v2174_v55 = vld [vmem:[#allocation2 + $0x130] sm:$0xff] }
  0xf7   : > { %v432_v5 = vpop.f32.mrf.mxu0  ;;  %544 = vmatpush1.bf16.msra.mxu0 %v524_v2  ;;  %v1095_v8 = vpop.f32.mrf.mxu1  ;;  %1207 = vmatpush1.bf16.msra.mxu1 %v1187_v4  ;;  %v1420_v2 = vunpack.c.l.bf16 %v1387_v58 }
  0xf8   : > { %v433_v7 = vadd.f32 %v432_v5, %v387_v54  ;;  %v1096_v9 = vadd.f32 %v1095_v8, %v1050_v6  ;;  %v1419_v5 = vunpack.c.h.bf16 %v1386_v57 }
  0xf9   : > { %v434_v11 = vpop.f32.mrf.mxu0  ;;  %v1097_v13 = vpop.f32.mrf.mxu1 }
  0xfa   : > { %v439_v12 = vpack.c.bf16 %v433_v7, %v433_v7  ;;  %v1102_v14 = vpack.c.bf16 %v1096_v9, %v1096_v9  ;;  %v435_v19 = vadd.f32 %v434_v11, %v387_v54  ;;  %v1098_v20 = vadd.f32 %v1097_v13, %v1050_v6 }
  0xfb   : > { %v436_v15 = vpop.f32.mrf.mxu0  ;;  %v1099_v16 = vpop.f32.mrf.mxu1  ;;  %v1421_v7 = vunpack.c.h.bf16 %v1387_v58 }
  0xfc   : > { %443 = vxpose.xlu0.c.b16.start.end [1/1] (short) %v439_v12, 128  ;;  %1106 = vxpose.xlu1.c.b16.start.end [1/1] (short) %v1102_v14, 128  ;;  %v440_v21 = vpack.c.bf16 %v435_v19, %v435_v19  ;;  %v1103_v22 = vpack.c.bf16 %v1098_v20, %v1098_v20  ;;  %v724_v15 = vld [vmem:[#allocation2 + $0x10] sm:$0xff]  ;;  %v725_v16 = vld [vmem:[#allocation2 + $0x18] sm:$0xff] }
  0xfd   : > { %v437_v17 = vpop.f32.mrf.mxu0  ;;  %v1100_v18 = vpop.f32.mrf.mxu1 }
  0xfe   : > { %v2166_v18 = vld [vmem:[#allocation2 + $0x140] sm:$0xff] }
  0xff   : > { %2893 = vst [vmem:[#allocation44_spill] sm:$0xff] %v2166_v18 }
 0x119   : > { %459 = vxpose.xlu0.c.b16.start.end [1/1] (short) %v440_v21, 128  ;;  %1122 = vxpose.xlu1.c.b16.start.end [1/1] (short) %v1103_v22, 128  ;;  %v1388_v21 = vld [vmem:[#allocation2 + $0x110] sm:$0xff]  ;;  %v1389_v22 = vld [vmem:[#allocation2 + $0x118] sm:$0xff] }
 0x15e   : > { %v451_v23 = vpop.trf.xlu0  ;;  %v1114_v24 = vpop.trf.xlu1 }
 0x15f   : > { %1726 = vmatmul.mubr.msk.bf16.vlgmr.msra.gmra.mxu0 %vm332_vm1, %v451_v23  ;;  %1752 = vmatmul.mubr.msk.bf16.vlgmr.msra.gmra.mxu1 %vm332_vm1, %v1114_v24  ;;  %v2164_v24 = vld [vmem:[#allocation2 + $0x40] sm:$0xff] }
 0x160   : > { %571 = vmatprep.mubr.bf16.mxu0 %v1840_v1  ;;  %1234 = vmatprep.mubr.bf16.mxu1 %v1840_v1  ;;  %2892 = vst [vmem:[#allocation43_spill] sm:$0xff] %v2164_v24 }
 0x162   : > { %v452_v25 = vpop.trf.xlu0  ;;  %v1115_v26 = vpop.trf.xlu1 }
 0x166   : > { %v453_v27 = vpop.trf.xlu0  ;;  %v1116_v28 = vpop.trf.xlu1 }
 0x167   : > { %1727 = vmatmul.mubr.msk.bf16.gmra.mxu0 %vm332_vm1, %v452_v25  ;;  %1753 = vmatmul.mubr.msk.bf16.gmra.mxu1 %vm332_vm1, %v1115_v26 }
 0x168   : > { %581 = vmatprep.mubr.bf16.mxu0 %v1840_v1  ;;  %1244 = vmatprep.mubr.bf16.mxu1 %v1840_v1 }
 0x16a   : > { %v454_v29 = vpop.trf.xlu0  ;;  %v1117_v30 = vpop.trf.xlu1 }
 0x16e   : > { %v455_v31 = vpop.trf.xlu0  ;;  %v1118_v32 = vpop.trf.xlu1 }
 0x16f   : > { %1728 = vmatmul.mubr.msk.bf16.gmra.mxu0 %vm332_vm1, %v453_v27  ;;  %1754 = vmatmul.mubr.msk.bf16.gmra.mxu1 %vm332_vm1, %v1116_v28  ;;  %v758_v28 = vunpack.c.l.bf16 %v724_v15 }
 0x170   : > { %591 = vmatprep.mubr.bf16.mxu0 %v1840_v1  ;;  %1254 = vmatprep.mubr.bf16.mxu1 %v1840_v1 }
 0x172   : > { %v456_v33 = vpop.trf.xlu0  ;;  %v1119_v34 = vpop.trf.xlu1 }
 0x176   : > { %v457_v35 = vpop.trf.xlu0  ;;  %v1120_v36 = vpop.trf.xlu1 }
 0x177   : > { %1729 = vmatmul.mubr.msk.bf16.gmra.mxu0 %vm332_vm1, %v454_v29  ;;  %1755 = vmatmul.mubr.msk.bf16.gmra.mxu1 %vm332_vm1, %v1117_v30  ;;  %v760_v30 = vunpack.c.l.bf16 %v725_v16 }
 0x178   : > { %601 = vmatprep.mubr.bf16.mxu0 %v1840_v1  ;;  %1264 = vmatprep.mubr.bf16.mxu1 %v1840_v1 }
 0x17a   : > { %v458_v37 = vpop.trf.xlu0  ;;  %v1121_v38 = vpop.trf.xlu1 }
 0x17e   : > { %v467_v39 = vpop.trf.xlu0  ;;  %v1130_v40 = vpop.trf.xlu1 }
 0x17f   : > { %1730 = vmatmul.mubr.msk.bf16.gmra.mxu0 %vm332_vm1, %v455_v31  ;;  %1756 = vmatmul.mubr.msk.bf16.gmra.mxu1 %vm332_vm1, %v1118_v32  ;;  %v1422_v32 = vunpack.c.l.bf16 %v1388_v21 }
 0x180   : > { %611 = vmatprep.mubr.bf16.mxu0 %v1840_v1  ;;  %1274 = vmatprep.mubr.bf16.mxu1 %v1840_v1 }
 0x182   : > { %v468_v41 = vpop.trf.xlu0  ;;  %v1131_v42 = vpop.trf.xlu1 }
 0x186   : > { %v469_v43 = vpop.trf.xlu0  ;;  %v1132_v44 = vpop.trf.xlu1 }
 0x187   : > { %1731 = vmatmul.mubr.msk.bf16.gmra.mxu0 %vm332_vm1, %v456_v33  ;;  %1757 = vmatmul.mubr.msk.bf16.gmra.mxu1 %vm332_vm1, %v1119_v34  ;;  %v1424_v34 = vunpack.c.l.bf16 %v1389_v22 }
 0x188   : > { %621 = vmatprep.mubr.bf16.mxu0 %v1840_v1  ;;  %1284 = vmatprep.mubr.bf16.mxu1 %v1840_v1 }
 0x18a   : > { %v470_v45 = vpop.trf.xlu0  ;;  %v1133_v46 = vpop.trf.xlu1 }
 0x18e   : > { %v471_v47 = vpop.trf.xlu0  ;;  %v1134_v48 = vpop.trf.xlu1 }
 0x18f   : > { %1732 = vmatmul.mubr.msk.bf16.gmra.mxu0 %vm332_vm1, %v457_v35  ;;  %1758 = vmatmul.mubr.msk.bf16.gmra.mxu1 %vm332_vm1, %v1120_v36  ;;  %v759_v35 = vunpack.c.h.bf16 %v724_v15 }
 0x190   : > { %631 = vmatprep.mubr.bf16.mxu0 %v1840_v1  ;;  %1294 = vmatprep.mubr.bf16.mxu1 %v1840_v1 }
 0x192   : > { %v472_v49 = vpop.trf.xlu0  ;;  %v1135_v50 = vpop.trf.xlu1 }
 0x196   : > { %v473_v51 = vpop.trf.xlu0  ;;  %v1136_v52 = vpop.trf.xlu1 }
 0x197   : > { %1733 = vmatmul.mubr.msk.bf16.gmra.mxu0 %vm332_vm1, %v458_v37  ;;  %1759 = vmatmul.mubr.msk.bf16.gmra.mxu1 %vm332_vm1, %v1121_v38  ;;  %v761_v37 = vunpack.c.h.bf16 %v725_v16  ;;  %v1423_v38 = vunpack.c.h.bf16 %v1388_v21 }
 0x198   : > { %641 = vmatprep.mubr.bf16.mxu0 %v1840_v1  ;;  %1304 = vmatprep.mubr.bf16.mxu1 %v1840_v1 }
 0x19a   : > { %v474_v53 = vpop.trf.xlu0  ;;  %v1137_v54 = vpop.trf.xlu1 }
 0x19f   : > { %1734 = vmatmul.mubr.msk.bf16.gmra.mxu0 %vm332_vm1, %v467_v39  ;;  %1760 = vmatmul.mubr.msk.bf16.gmra.mxu1 %vm332_vm1, %v1130_v40  ;;  %v1425_v40 = vunpack.c.h.bf16 %v1389_v22 }
 0x1a0   : > { %651 = vmatprep.mubr.bf16.mxu0 %v1840_v1  ;;  %1314 = vmatprep.mubr.bf16.mxu1 %v1840_v1 }
 0x1a7   : > { %1735 = vmatmul.mubr.msk.bf16.gmra.mxu0 %vm332_vm1, %v468_v41  ;;  %1761 = vmatmul.mubr.msk.bf16.gmra.mxu1 %vm332_vm1, %v1131_v42 }
 0x1a8   : > { %661 = vmatprep.mubr.bf16.mxu0 %v1840_v1  ;;  %1324 = vmatprep.mubr.bf16.mxu1 %v1840_v1 }
 0x1af   : > { %1736 = vmatmul.mubr.msk.bf16.gmra.mxu0 %vm332_vm1, %v469_v43  ;;  %1762 = vmatmul.mubr.msk.bf16.gmra.mxu1 %vm332_vm1, %v1132_v44 }
 0x1b0   : > { %671 = vmatprep.mubr.bf16.mxu0 %v1840_v1  ;;  %1334 = vmatprep.mubr.bf16.mxu1 %v1840_v1 }
 0x1b7   : > { %1737 = vmatmul.mubr.msk.bf16.gmra.mxu0 %vm332_vm1, %v470_v45  ;;  %1763 = vmatmul.mubr.msk.bf16.gmra.mxu1 %vm332_vm1, %v1133_v46 }
 0x1b8   : > { %681 = vmatprep.mubr.bf16.mxu0 %v1840_v1  ;;  %1344 = vmatprep.mubr.bf16.mxu1 %v1840_v1 }
 0x1bf   : > { %1738 = vmatmul.mubr.msk.bf16.gmra.mxu0 %vm332_vm1, %v471_v47  ;;  %1764 = vmatmul.mubr.msk.bf16.gmra.mxu1 %vm332_vm1, %v1134_v48  ;;  %v2188_v48 = vld [vmem:[#allocation2 + $0x150] sm:$0xff] }
 0x1c0   : > { %691 = vmatprep.mubr.bf16.mxu0 %v1840_v1  ;;  %1354 = vmatprep.mubr.bf16.mxu1 %v1840_v1 }
 0x1c7   : > { %1739 = vmatmul.mubr.msk.bf16.gmra.mxu0 %vm332_vm1, %v472_v49  ;;  %1765 = vmatmul.mubr.msk.bf16.gmra.mxu1 %vm332_vm1, %v1135_v50 }
 0x1c8   : > { %701 = vmatprep.mubr.bf16.mxu0 %v1840_v1  ;;  %1364 = vmatprep.mubr.bf16.mxu1 %v1840_v1 }
 0x1cf   : > { %1740 = vmatmul.mubr.msk.bf16.gmra.mxu0 %vm332_vm1, %v473_v51  ;;  %1766 = vmatmul.mubr.msk.bf16.gmra.mxu1 %vm332_vm1, %v1136_v52  ;;  %v2248_v52 = vld [vmem:[#allocation2 + $0x80] sm:$0xff] }
 0x1d0   : > { %711 = vmatprep.mubr.bf16.mxu0 %v1840_v1  ;;  %1374 = vmatprep.mubr.bf16.mxu1 %v1840_v1  ;;  %v757_v1 = vunpack.c.h.bf16 %v723_v56 }
 0x1d7   : > { %1741 = vmatmul.mubr.msk.bf16.gmra.mxu0 %vm332_vm1, %v474_v53  ;;  %1767 = vmatmul.mubr.msk.bf16.gmra.mxu1 %vm332_vm1, %v1137_v54 }
 0x21f   : > { %v563_v59 = vpop.f32.mrf.mxu0  ;;  %v1226_v61 = vpop.f32.mrf.mxu1 }
 0x220   : > { %v2038_v8 = vmul.f32 %v754_v60, %v563_v59  ;;  %v2042_v12 = vmul.f32 %v1418_v63, %v1226_v61 }
 0x221   : > { %v565_v0 = vpop.f32.mrf.mxu0  ;;  %v1228_v4 = vpop.f32.mrf.mxu1 }
 0x222   : > { %2854 = vst [vmem:[#allocation5_spill] sm:$0xff] %v2038_v8  ;;  %2856 = vst [vmem:[#allocation7_spill] sm:$0xff] %v2042_v12  ;;  %v2046_v17 = vmul.f32 %v755_v3, %v565_v0  ;;  %v2052_v23 = vmul.f32 %v1419_v5, %v1228_v4  ;;  %v2198_v12 = vld [vmem:[#allocation2 + $0x158] sm:$0xff] }
 0x223   : > { %v567_v6 = vpop.f32.mrf.mxu0  ;;  %v1230_v11 = vpop.f32.mrf.mxu1 }
 0x224   : > { %v2040_v9 = vmul.f32 %v756_v62, %v567_v6  ;;  %v2044_v13 = vmul.f32 %v1420_v2, %v1230_v11  ;;  %2858 = vst [vmem:[#allocation9_spill] sm:$0xff] %v2046_v17  ;;  %2860 = vst [vmem:[#allocation11_spill] sm:$0xff] %v2052_v23  ;;  %v291_v11 = vcombine.high %v1928_v10, %v1928_v10  ;;  %v2210_v23 = vld [vmem:[#allocation2 + $0x160] sm:$0xff]  ;;  %v2218_v17 = vld [vmem:[#allocation2 + $0x68] sm:$0xff] }
 0x225   : > { %v569_v14 = vpop.f32.mrf.mxu0  ;;  %v1232_v20 = vpop.f32.mrf.mxu1 }
 0x226   : > { %2855 = vst [vmem:[#allocation6_spill] sm:$0xff] %v2040_v9  ;;  %2857 = vst [vmem:[#allocation8_spill] sm:$0xff] %v2044_v13  ;;  %v2050_v19 = vmul.f32 %v757_v1, %v569_v14  ;;  %v2056_v25 = vmul.f32 %v1421_v7, %v1232_v20  ;;  %v294_v16 = vpack.c.bf16 %v291_v11, %v291_v11  ;;  %v2178_v11 = vld [vmem:[#allocation2 + $0x148] sm:$0xff]  ;;  %v2186_v13 = vld [vmem:[#allocation2 + $0x50] sm:$0xff] }
 0x227   : > { %v573_v26 = vpop.f32.mrf.mxu0  ;;  %v1236_v29 = vpop.f32.mrf.mxu1 }
 0x228   : > { %2859 = vst [vmem:[#allocation10_spill] sm:$0xff] %v2050_v19  ;;  %2861 = vst [vmem:[#allocation12_spill] sm:$0xff] %v2056_v25  ;;  %v2062_v41 = vmul.f32 %v758_v28, %v573_v26  ;;  %v2066_v44 = vmul.f32 %v1422_v32, %v1236_v29  ;;  %946 = vmatprep.mubr.bf16.mxu0 %v294_v16  ;;  %1610 = vmatprep.mubr.bf16.mxu1 %v294_v16  ;;  %v2140_v32 = vld [vmem:[#allocation2 + $0x20] sm:$0xff]  ;;  %v2196_v25 = vld [vmem:[#allocation2 + $0x58] sm:$0xff] }
 0x229   : > { %v575_v33 = vpop.f32.mrf.mxu0  ;;  %v1238_v36 = vpop.f32.mrf.mxu1  ;;  %2887 = vst [vmem:[#allocation38_spill] sm:$0xff] %v2140_v32  ;;  %v2220_v19 = vld [vmem:[#allocation2 + $0x168] sm:$0xff] }
 0x22a   : > { %2862 = vst [vmem:[#allocation13_spill] sm:$0xff] %v2062_v41  ;;  %2864 = vst [vmem:[#allocation15_spill] sm:$0xff] %v2066_v44  ;;  %v2070_v47 = vmul.f32 %v759_v35, %v575_v33  ;;  %v2076_v51 = vmul.f32 %v1423_v38, %v1238_v36  ;;  %v2142_v33 = vld [vmem:[#allocation2 + $0x28] sm:$0xff]  ;;  %v2148_v36 = vld [vmem:[#allocation2 + $0x30] sm:$0xff]  ;;  %v1445_v32 = vunpack.c.h.bf16 %v2220_v19 }
 0x22b   : > { %v577_v39 = vpop.f32.mrf.mxu0  ;;  %v1240_v43 = vpop.f32.mrf.mxu1  ;;  %2888 = vst [vmem:[#allocation39_spill] sm:$0xff] %v2142_v33  ;;  %v2146_v35 = vld [vmem:[#allocation2 + $0x128] sm:$0xff]  ;;  %v2152_v38 = vld [vmem:[#allocation2 + $0x120] sm:$0xff]  ;;  %2897 = vst [vmem:[#allocation48_spill] sm:$0xff] %v2220_v19 }
 0x22c   : > { %v2064_v42 = vmul.f32 %v760_v30, %v577_v39  ;;  %v2068_v45 = vmul.f32 %v1424_v34, %v1240_v43  ;;  %2866 = vst [vmem:[#allocation17_spill] sm:$0xff] %v2070_v47  ;;  %2868 = vst [vmem:[#allocation19_spill] sm:$0xff] %v2076_v51  ;;  %v2154_v39 = vld [vmem:[#allocation2 + $0x38] sm:$0xff]  ;;  %v2206_v44 = vld [vmem:[#allocation2 + $0x60] sm:$0xff] }
 0x22d   : > { %v579_v46 = vpop.f32.mrf.mxu0  ;;  %v1242_v50 = vpop.f32.mrf.mxu1  ;;  %2889 = vst [vmem:[#allocation40_spill] sm:$0xff] %v2146_v35  ;;  %2890 = vst [vmem:[#allocation41_spill] sm:$0xff] %v2152_v38  ;;  %v2230_v41 = vld [vmem:[#allocation2 + $0x170] sm:$0xff]  ;;  %v2238_v51 = vld [vmem:[#allocation2 + $0x78] sm:$0xff] }
 0x22e   : > { %2863 = vst [vmem:[#allocation14_spill] sm:$0xff] %v2064_v42  ;;  %2865 = vst [vmem:[#allocation16_spill] sm:$0xff] %v2068_v45  ;;  %v2074_v49 = vmul.f32 %v761_v37, %v579_v46  ;;  %v2080_v53 = vmul.f32 %v1425_v40, %v1242_v50  ;;  %v2156_v40 = vld [vmem:[#allocation2 + $0x138] sm:$0xff]  ;;  %v2176_v46 = vld [vmem:[#allocation2 + $0x48] sm:$0xff]  ;;  %v1446_v50 = vunpack.c.l.bf16 %v2230_v41 }
 0x22f   : > { %v2082_v54 = vpop.f32.mrf.mxu0  ;;  %v2086_v56 = vpop.f32.mrf.mxu1  ;;  %2891 = vst [vmem:[#allocation42_spill] sm:$0xff] %v2156_v40  ;;  %v2228_v45 = vld [vmem:[#allocation2 + $0x70] sm:$0xff] }
 0x230   : > { %2867 = vst [vmem:[#allocation18_spill] sm:$0xff] %v2074_v49  ;;  %2869 = vst [vmem:[#allocation20_spill] sm:$0xff] %v2080_v53  ;;  %v2240_v53 = vld [vmem:[#allocation2 + $0x178] sm:$0xff]  ;;  %v783_v49 = vunpack.c.h.bf16 %v2228_v45  ;;  %v2264_v40 = vld [vmem:[#allocation2 + $0x90] sm:$0xff] }
 0x231   : > { %2870 = vst [vmem:[#allocation21_spill] sm:$0xff] %v2082_v54  ;;  %2871 = vst [vmem:[#allocation22_spill] sm:$0xff] %v2086_v56  ;;  %v2090_v58 = vpop.f32.mrf.mxu0  ;;  %v2092_v59 = vpop.f32.mrf.mxu1  ;;  %v2250_v56 = vld [vmem:[#allocation2 + $0x180] sm:$0xff] }
 0x232   : > { %2872 = vst [vmem:[#allocation23_spill] sm:$0xff] %v2090_v58  ;;  %2873 = vst [vmem:[#allocation24_spill] sm:$0xff] %v2092_v59  ;;  %v782_v58 = vunpack.c.l.bf16 %v2228_v45  ;;  %v2272_v45 = vld [vmem:[#allocation2 + $0x98] sm:$0xff] }
 0x233   : > { %v2094_v60 = vpop.f32.mrf.mxu0  ;;  %v2096_v61 = vpop.f32.mrf.mxu1 }
 0x234   : > { %2874 = vst [vmem:[#allocation25_spill] sm:$0xff] %v2094_v60  ;;  %2875 = vst [vmem:[#allocation26_spill] sm:$0xff] %v2096_v61  ;;  %v2256_v61 = vld [vmem:[#allocation2 + $0x88] sm:$0xff] }
 0x235   : > { %v2098_v62 = vpop.f32.mrf.mxu0  ;;  %v2100_v63 = vpop.f32.mrf.mxu1  ;;  %v2258_v60 = vld [vmem:[#allocation2 + $0x188] sm:$0xff] }
 0x237   : > { %v2102_v0 = vpop.f32.mrf.mxu0  ;;  %v2104_v2 = vpop.f32.mrf.mxu1 }
 0x238   : > { %2876 = vst [vmem:[#allocation27_spill] sm:$0xff] %v2104_v2  ;;  %v781_v2 = vunpack.c.h.bf16 %v2218_v17 }
 0x239   : > { %v2106_v3 = vpop.f32.mrf.mxu0  ;;  %v2108_v4 = vpop.f32.mrf.mxu1 }
 0x23b   : > { %v2110_v1 = vpop.f32.mrf.mxu0  ;;  %v2112_v5 = vpop.f32.mrf.mxu1 }
 0x23c   : > { %2877 = vst [vmem:[#allocation28_spill] sm:$0xff] %v2110_v1  ;;  %2878 = vst [vmem:[#allocation29_spill] sm:$0xff] %v2112_v5  ;;  %v2266_v5 = vld [vmem:[#allocation2 + $0x190] sm:$0xff]  ;;  %v785_v1 = vunpack.c.h.bf16 %v2238_v51 }
 0x23d   : > { %v2114_v6 = vpop.f32.mrf.mxu0  ;;  %v2116_v7 = vpop.f32.mrf.mxu1  ;;  %2898 = vst [vmem:[#allocation49_spill] sm:$0xff] %v2266_v5 }
 0x23e   : > { %2879 = vst [vmem:[#allocation30_spill] sm:$0xff] %v2116_v7  ;;  %v1448_v7 = vunpack.c.l.bf16 %v2240_v53 }
 0x23f   : > { %v2120_v14 = vpop.f32.mrf.mxu0  ;;  %v2122_v15 = vpop.f32.mrf.mxu1 }
 0x240   : > { %2880 = vst [vmem:[#allocation31_spill] sm:$0xff] %v2120_v14  ;;  %2881 = vst [vmem:[#allocation32_spill] sm:$0xff] %v2122_v15  ;;  %v1447_v15 = vunpack.c.h.bf16 %v2230_v41  ;;  %v784_v14 = vunpack.c.l.bf16 %v2238_v51  ;;  %v2901_v51 = vunpack.c.h.bf16 %v2146_v35 }
 0x241   : > { %v2124_v20 = vpop.f32.mrf.mxu0  ;;  %v2126_v21 = vpop.f32.mrf.mxu1 }
 0x242   : > { %2882 = vst [vmem:[#allocation33_spill] sm:$0xff] %v2124_v20  ;;  %2883 = vst [vmem:[#allocation34_spill] sm:$0xff] %v2126_v21  ;;  %v2903_v21 = vunpack.c.l.bf16 %v2148_v36  ;;  %v2906_v20 = vunpack.c.h.bf16 %v2174_v55 }
 0x243   : > { %v2128_v22 = vpop.f32.mrf.mxu0  ;;  %v2130_v26 = vpop.f32.mrf.mxu1 }
 0x244   : > { %2884 = vst [vmem:[#allocation35_spill] sm:$0xff] %v2128_v22  ;;  %2885 = vst [vmem:[#allocation36_spill] sm:$0xff] %v2130_v26  ;;  %v1449_v22 = vunpack.c.h.bf16 %v2240_v53  ;;  %v2293_v53 = vmul.f32 %v2901_v51, %v2100_v63  ;;  %v2298_v18 = vmul.f32 %v2903_v21, %v2102_v0  ;;  %v2308_v24 = vmul.f32 %v2906_v20, %v2108_v4 }
 0x245   : > { %v2132_v28 = vpop.f32.mrf.mxu0  ;;  %v2134_v29 = vpop.f32.mrf.mxu1  ;;  %v2908_v63 = vunpack.c.h.bf16 %v2154_v39  ;;  %v2909_v0 = vunpack.c.h.bf16 %v2176_v46  ;;  %v2911_v4 = vunpack.c.l.bf16 %v2186_v13 }
 0x246   : > { %2902 = vst [vmem:[#allocation51_spill] sm:$0xff] %v2293_v53  ;;  %2904 = vst [vmem:[#allocation52_spill] sm:$0xff] %v2298_v18 }
 0x247   : > { %v2136_v10 = vpop.f32.mrf.mxu0  ;;  %v2138_v30 = vpop.f32.mrf.mxu1  ;;  %2907 = vst [vmem:[#allocation53_spill] sm:$0xff] %v2308_v24  ;;  %v2313_v51 = vmul.f32 %v2908_v63, %v2114_v6  ;;  %v2318_v21 = vmul.f32 %v2909_v0, %v2132_v28  ;;  %v2912_v6 = vunpack.c.h.bf16 %v2186_v13  ;;  %v2913_v28 = vunpack.c.h.bf16 %v2188_v48 }
 0x248   : > { %2886 = vst [vmem:[#allocation37_spill] sm:$0xff] %v2138_v30  ;;  %v2328_v20 = vmul.f32 %v2911_v4, %v2136_v10 }
 0x249   : > { %v2144_v34 = vpop.f32.mrf.mxu0  ;;  %v2150_v37 = vpop.f32.mrf.mxu1 }
 0x24a   : > { %v2333_v63 = vmul.f32 %v2912_v6, %v2144_v34  ;;  %v2338_v0 = vmul.f32 %v2913_v28, %v2150_v37  ;;  %v2915_v37 = vunpack.c.h.bf16 %v2196_v25 }
 0x24b   : > { %v2158_v43 = vpop.f32.mrf.mxu0  ;;  %v2168_v31 = vpop.f32.mrf.mxu1 }
 0x24d   : > { %v2180_v16 = vpop.f32.mrf.mxu0  ;;  %v2190_v57 = vpop.f32.mrf.mxu1 }
 0x24e   : > { %2894 = vst [vmem:[#allocation45_spill] sm:$0xff] %v2190_v57  ;;  %v2899_v57 = vunpack.c.h.bf16 %v2142_v33  ;;  %v841_v28 = vmul.f32 %v2915_v37, %v2180_v16  ;;  %v2932_v37 = vunpack.c.l.bf16 %v2250_v56 }
 0x24f   : > { %v2200_v27 = vpop.f32.mrf.mxu0  ;;  %v2208_v9 = vpop.f32.mrf.mxu1 }
 0x250   : > { %2895 = vst [vmem:[#allocation46_spill] sm:$0xff] %v2200_v27  ;;  %2896 = vst [vmem:[#allocation47_spill] sm:$0xff] %v2208_v9  ;;  %v2285_v19 = vmul.f32 %v2899_v57, %v2098_v62  ;;  %v2905_v57 = vunpack.c.h.bf16 %v2148_v36 }
 0x251   : > { %v2216_v42 = vpop.f32.mrf.mxu0  ;;  %v2226_v47 = vpop.f32.mrf.mxu1 }
 0x252   : > { %2900 = vst [vmem:[#allocation50_spill] sm:$0xff] %v2285_v19  ;;  %v2303_v62 = vmul.f32 %v2905_v57, %v2106_v3  ;;  %v2910_v3 = vunpack.c.h.bf16 %v2178_v11 }
 0x253   : > { %v2236_v54 = vpop.f32.mrf.mxu0  ;;  %v2245_v59 = vpop.f32.mrf.mxu1 }
 0x254   : > { %v2323_v36 = vmul.f32 %v2910_v3, %v2134_v29  ;;  %v2914_v29 = vunpack.c.l.bf16 %v2196_v25 }
 0x255   : > { %v629_v8 = vpop.f32.mrf.mxu0  ;;  %v1292_v38 = vpop.f32.mrf.mxu1 }
 0x256   : > { %v2343_v3 = vmul.f32 %v2914_v29, %v2158_v43  ;;  %v845_v10 = vmul.f32 %v781_v2, %v629_v8  ;;  %v1509_v13 = vmul.f32 %v1445_v32, %v1292_v38  ;;  %v2916_v43 = vunpack.c.h.bf16 %v2206_v44 }
 0x257   : > { %v633_v26 = vpop.f32.mrf.mxu0  ;;  %v1296_v41 = vpop.f32.mrf.mxu1  ;;  %v2924_v38 = vld [vmem:[#allocation46_spill] sm:$0xff] }
 0x258   : > { %v846_v34 = vmul.f32 %v782_v58, %v633_v26  ;;  %v843_v29 = vmul.f32 %v2916_v43, %v2216_v42  ;;  %v2918_v58 = vunpack.c.l.bf16 %v2218_v17  ;;  %v2923_v17 = vunpack.c.h.bf16 %v2198_v12 }
 0x259   : > { %v635_v27 = vpop.f32.mrf.mxu0  ;;  %v1298_v30 = vpop.f32.mrf.mxu1  ;;  %v2934_v43 = vunpack.c.l.bf16 %v2258_v60 }
 0x25a   : > { %v847_v4 = vmul.f32 %v783_v49, %v635_v27  ;;  %v1511_v6 = vmul.f32 %v1447_v15, %v1298_v30  ;;  %v2351_v27 = vld [vmem:[#allocation2 + $0x198] sm:$0xff]  ;;  %v844_v2 = vmul.f32 %v2918_v58, %v2236_v54  ;;  %v2919_v15 = vunpack.c.l.bf16 %v2198_v12 }
 0x25b   : > { %v637_v9 = vpop.f32.mrf.mxu0  ;;  %v1300_v57 = vpop.f32.mrf.mxu1  ;;  %v895_v30 = vpack.c.bf16 %v845_v10, %v843_v29  ;;  %v2930_v12 = vunpack.c.l.bf16 %v2256_v61 }
 0x25c   : > { %v848_v53 = vmul.f32 %v784_v14, %v637_v9  ;;  %v1512_v35 = vmul.f32 %v1448_v7, %v1300_v57  ;;  %v1510_v9 = vmul.f32 %v1446_v50, %v1296_v41  ;;  %v2362_v42 = vmul.f32 %v2919_v15, %v2168_v31 }
 0x25d   : > { %v639_v19 = vpop.f32.mrf.mxu0  ;;  %v1302_v33 = vpop.f32.mrf.mxu1  ;;  %v1456_v41 = vunpack.c.l.bf16 %v2351_v27  ;;  %v2928_v57 = vunpack.c.l.bf16 %v2248_v52 }
 0x25e   : > { %v849_v18 = vmul.f32 %v785_v1, %v639_v19  ;;  %v1513_v24 = vmul.f32 %v1449_v22, %v1302_v33  ;;  %v2917_v19 = vunpack.c.h.bf16 %v2210_v23  ;;  %v896_v1 = vpack.c.bf16 %v848_v53, %v846_v34  ;;  %v2926_v53 = vld [vmem:[#allocation47_spill] sm:$0xff] }
 0x25f   : > { %v643_v5 = vpop.f32.mrf.mxu0  ;;  %v1306_v8 = vpop.f32.mrf.mxu1  ;;  %v1560_v32 = vpack.c.bf16 %v1512_v35, %v1510_v9  ;;  %v893_v34 = vpack.c.bf16 %v841_v28, %v2333_v63  ;;  %v2938_v63 = vunpack.c.h.bf16 %v2256_v61  ;;  %v2945_v61 = vld [vmem:[#allocation43_spill] sm:$0xff] }
 0x260   : > { %v897_v14 = vpack.c.bf16 %v849_v18, %v847_v4  ;;  %v1507_v49 = vmul.f32 %v2917_v19, %v2226_v47  ;;  %v1561_v25 = vpack.c.bf16 %v1513_v24, %v1511_v6  ;;  %v2920_v18 = vld [vmem:[#allocation48_spill] sm:$0xff]  ;;  %v2922_v47 = vld [vmem:[#allocation45_spill] sm:$0xff]  ;;  %v2925_v24 = vunpack.c.l.bf16 %v2206_v44 }
 0x261   : > { %v645_v7 = vpop.f32.mrf.mxu0  ;;  %v2921_v22 = vunpack.c.l.bf16 %v2920_v18  ;;  %v1308_v33 = vpop.f32.mrf.mxu1  ;;  %v1505_v54 = vmul.f32 %v2923_v17, %v2922_v47  ;;  %v2379_v10 = vmul.f32 %v2928_v57, %v643_v5  ;;  %v2944_v18 = vld [vmem:[#allocation33_spill] sm:$0xff]  ;;  %v2949_v47 = vld [vmem:[#allocation34_spill] sm:$0xff]  ;;  %v2950_v17 = vld [vmem:[#allocation44_spill] sm:$0xff] }
 0x262   : > { %914 = vmatprep.subr.bf16.mxu0 %v897_v14  ;;  %v842_v50 = vmul.f32 %v2925_v24, %v2924_v38  ;;  %v1559_v16 = vpack.c.bf16 %v1509_v13, %v1507_v49  ;;  %1578 = vmatprep.subr.bf16.mxu1 %v1561_v25  ;;  %v793_v13 = vunpack.c.h.bf16 %v2272_v45  ;;  %v2936_v14 = vunpack.c.h.bf16 %v2248_v52  ;;  %v2952_v24 = vld [vmem:[#allocation35_spill] sm:$0xff]  ;;  %v2956_v57 = vld [vmem:[#allocation36_spill] sm:$0xff] }
 0x263   : > { %v1508_v26 = vmul.f32 %v2921_v22, %v2245_v59  ;;  %v647_v31 = vpop.f32.mrf.mxu0  ;;  %915 = vmatpush1.bf16.msra.mxu0 %v896_v1  ;;  %v2927_v59 = vunpack.c.l.bf16 %v2210_v23  ;;  %2929 = vst [vmem:[#allocation48_spill] sm:$0xff] %v2379_v10  ;;  %v1310_v44 = vpop.f32.mrf.mxu1  ;;  %1579 = vmatpush1.bf16.msra.mxu1 %v1560_v32  ;;  %v2389_v23 = vmul.f32 %v2932_v37, %v1306_v8  ;;  %v2942_v52 = vunpack.c.h.bf16 %v2258_v60  ;;  %v2958_v37 = vld [vmem:[#allocation29_spill] sm:$0xff]  ;;  %v2619_v25 = vld [vmem:[#allocation2 + $0xb0] sm:$0xff]  ;;  %v2637_v10 = vld [vmem:[#allocation2 + $0xc8] sm:$0xff] }
 0x264   : > { %v2383_v4 = vmul.f32 %v2930_v12, %v647_v31  ;;  %916 = vmatprep.subr.bf16.mxu0 %v895_v30  ;;  %v894_v6 = vpack.c.bf16 %v844_v2, %v842_v50  ;;  %v2393_v5 = vmul.f32 %v2934_v43, %v1310_v44  ;;  %1580 = vmatprep.subr.bf16.mxu1 %v1559_v16  ;;  %v2940_v2 = vunpack.c.h.bf16 %v2250_v56  ;;  %v2947_v30 = vld [vmem:[#allocation37_spill] sm:$0xff]  ;;  %v2621_v49 = vld [vmem:[#allocation2 + $0x1b0] sm:$0xff]  ;;  %v2625_v56 = vld [vmem:[#allocation2 + $0xb8] sm:$0xff] }
 0x265   : > { %v1506_v35 = vmul.f32 %v2927_v59, %v2926_v53  ;;  %2933 = vst [vmem:[#allocation46_spill] sm:$0xff] %v2389_v23  ;;  %v649_v29 = vpop.f32.mrf.mxu0  ;;  %v2397_v19 = vmul.f32 %v2936_v14, %v645_v7  ;;  %v1312_v8 = vpop.f32.mrf.mxu1  ;;  %v1557_v58 = vpack.c.bf16 %v1505_v54, %v2338_v0  ;;  %v2946_v22 = vunpack.c.h.bf16 %v2945_v61  ;;  %v2954_v59 = vld [vmem:[#allocation28_spill] sm:$0xff] }
 0x266   : > { %2931 = vst [vmem:[#allocation45_spill] sm:$0xff] %v2383_v4  ;;  %2935 = vst [vmem:[#allocation47_spill] sm:$0xff] %v2393_v5  ;;  %v2403_v28 = vmul.f32 %v2938_v63, %v649_v29  ;;  %v2408_v1 = vmul.f32 %v2940_v2, %v1308_v33  ;;  %v2414_v7 = vmul.f32 %v2942_v52, %v1312_v8  ;;  %v2948_v0 = vunpack.c.l.bf16 %v2188_v48  ;;  %v2961_v29 = vld [vmem:[#allocation30_spill] sm:$0xff]  ;;  %v2963_v63 = vld [vmem:[#allocation31_spill] sm:$0xff] }
 0x267   : > { %v1558_v9 = vpack.c.bf16 %v1508_v26, %v1506_v35  ;;  %2937 = vst [vmem:[#allocation54_spill] sm:$0xff] %v2397_v19  ;;  %v653_v15 = vpop.f32.mrf.mxu0  ;;  %917 = vmatpush1.bf16.msra.mxu0 %v894_v6  ;;  %v835_v26 = vmul.f32 %v2946_v22, %v2944_v18  ;;  %v1316_v33 = vpop.f32.mrf.mxu1  ;;  %v1457_v60 = vunpack.c.h.bf16 %v2351_v27  ;;  %v2951_v54 = vunpack.c.h.bf16 %v2950_v17  ;;  %v2635_v5 = vld [vmem:[#allocation2 + $0x1c0] sm:$0xff]  ;;  %v2639_v4 = vld [vmem:[#allocation2 + $0x1c8] sm:$0xff]  ;;  %v2655_v19 = vld [vmem:[#allocation2 + $0x1d0] sm:$0xff] }
 0x268   : > { %2939 = vst [vmem:[#allocation55_spill] sm:$0xff] %v2403_v28  ;;  %2941 = vst [vmem:[#allocation56_spill] sm:$0xff] %v2408_v1  ;;  %v1502_v32 = vmul.f32 %v2948_v0, %v2947_v30  ;;  %918 = vmatprep.subr.bf16.mxu0 %v893_v34  ;;  %v2953_v50 = vunpack.c.l.bf16 %v2176_v46  ;;  %v892_v48 = vpack.c.bf16 %v2343_v3, %v2328_v20  ;;  %v2955_v35 = vunpack.c.l.bf16 %v2154_v39  ;;  %v2959_v20 = vld [vmem:[#allocation42_spill] sm:$0xff] }
 0x269   : > { %2943 = vst [vmem:[#allocation57_spill] sm:$0xff] %v2414_v7  ;;  %1581 = vmatpush1.bf16.msra.mxu1 %v1558_v9  ;;  %v1499_v38 = vmul.f32 %v2951_v54, %v2949_v47  ;;  %v655_v53 = vpop.f32.mrf.mxu0  ;;  %v2957_v12 = vunpack.c.l.bf16 %v2178_v11  ;;  %v891_v34 = vpack.c.bf16 %v2318_v21, %v835_v26  ;;  %v1318_v6 = vpop.f32.mrf.mxu1  ;;  %v2960_v3 = vunpack.c.l.bf16 %v2959_v20 }
 0x26a   : > { %v836_v16 = vmul.f32 %v2953_v50, %v2952_v24  ;;  %1582 = vmatprep.subr.bf16.mxu1 %v1557_v58  ;;  %v832_v27 = vmul.f32 %v2955_v35, %v2954_v59  ;;  %v1556_v46 = vpack.c.bf16 %v2362_v42, %v1502_v32  ;;  %v2962_v9 = vunpack.c.h.bf16 %v2959_v20  ;;  %v2965_v42 = vld [vmem:[#allocation32_spill] sm:$0xff]  ;;  %v2629_v24 = vld [vmem:[#allocation2 + $0xc0] sm:$0xff] }
 0x26b   : > { %v1500_v44 = vmul.f32 %v2957_v12, %v2956_v57  ;;  %v1496_v43 = vmul.f32 %v2960_v3, %v2958_v37  ;;  %v2964_v39 = vunpack.c.l.bf16 %v2945_v61  ;;  %v1555_v11 = vpack.c.bf16 %v2323_v36, %v1499_v38  ;;  %v657_v58 = vpop.f32.mrf.mxu0  ;;  %919 = vmatpush1.bf16.msra.mxu0 %v892_v48  ;;  %v1320_v61 = vpop.f32.mrf.mxu1  ;;  %v2984_v57 = vld [vmem:[#allocation23_spill] sm:$0xff] }
 0x26c   : > { %v1497_v14 = vmul.f32 %v2962_v9, %v2961_v29  ;;  %v1430_v21 = vunpack.c.l.bf16 %v2174_v55  ;;  %v2966_v2 = vunpack.c.l.bf16 %v2950_v17  ;;  %v2967_v18 = vunpack.c.l.bf16 %v2264_v40  ;;  %920 = vmatprep.subr.bf16.mxu0 %v891_v34  ;;  %v2971_v55 = vld [vmem:[#allocation49_spill] sm:$0xff]  ;;  %v2987_v34 = vld [vmem:[#allocation27_spill] sm:$0xff] }
 0x26d   : > { %v834_v8 = vmul.f32 %v2964_v39, %v2963_v63  ;;  %v2969_v26 = vunpack.c.l.bf16 %v2272_v45  ;;  %1583 = vmatpush1.bf16.msra.mxu1 %v1556_v46  ;;  %v889_v36 = vpack.c.bf16 %v2313_v51, %v2303_v62  ;;  %v2972_v32 = vunpack.c.l.bf16 %v2971_v55  ;;  %v1322_v62 = vpop.f32.mrf.mxu1  ;;  %v2978_v51 = vld [vmem:[#allocation53_spill] sm:$0xff]  ;;  %v2992_v9 = vld [vmem:[#allocation39_spill] sm:$0xff]  ;;  %v2994_v39 = vld [vmem:[#allocation52_spill] sm:$0xff] }
 0x26e   : > { %v1498_v52 = vmul.f32 %v2966_v2, %v2965_v42  ;;  %v2459_v22 = vmul.f32 %v2967_v18, %v653_v15  ;;  %v2471_v17 = vmul.f32 %v1456_v41, %v1320_v61  ;;  %1584 = vmatprep.subr.bf16.mxu1 %v1555_v11  ;;  %v659_v15 = vpop.f32.mrf.mxu0  ;;  %v2975_v45 = vunpack.c.h.bf16 %v2264_v40  ;;  %v2991_v29 = vld [vmem:[#allocation25_spill] sm:$0xff]  ;;  %v2997_v42 = vld [vmem:[#allocation40_spill] sm:$0xff]  ;;  %v2999_v18 = vld [vmem:[#allocation50_spill] sm:$0xff] }
 0x26f   : > { %v2463_v30 = vmul.f32 %v2969_v26, %v657_v58  ;;  %v890_v0 = vpack.c.bf16 %v836_v16, %v834_v8  ;;  %v2469_v47 = vmul.f32 %v2972_v32, %v1316_v33  ;;  %v2479_v50 = vmul.f32 %v793_v13, %v659_v15  ;;  %v2985_v13 = vld [vmem:[#allocation38_spill] sm:$0xff]  ;;  %v2499_v37 = vpop.f32.mrf.mxu1  ;;  %v2627_v41 = vld [vmem:[#allocation2 + $0x1b8] sm:$0xff] }
 0x270   : > { %2968 = vst [vmem:[#allocation33_spill] sm:$0xff] %v2459_v22  ;;  %2974 = vst [vmem:[#allocation34_spill] sm:$0xff] %v2471_v17  ;;  %v1554_v54 = vpack.c.bf16 %v1500_v44, %v1498_v52  ;;  %v2475_v38 = vmul.f32 %v2975_v45, %v655_v53  ;;  %v1553_v16 = vpack.c.bf16 %v1497_v14, %v2978_v51  ;;  %v2979_v33 = vunpack.c.h.bf16 %v2971_v55  ;;  %v2490_v40 = vpop.f32.mrf.mxu0  ;;  %v2983_v53 = vld [vmem:[#allocation41_spill] sm:$0xff]  ;;  %v3005_v45 = vld [vmem:[#allocation22_spill] sm:$0xff] }
 0x271   : > { %2970 = vst [vmem:[#allocation43_spill] sm:$0xff] %v2463_v30  ;;  %2973 = vst [vmem:[#allocation37_spill] sm:$0xff] %v2469_v47  ;;  %v2488_v59 = vmul.f32 %v1457_v60, %v1322_v62  ;;  %921 = vmatpush1.bf16.msra.mxu0 %v890_v0  ;;  %v1426_v35 = vunpack.c.l.bf16 %v2983_v53  ;;  %v2986_v12 = vunpack.c.h.bf16 %v2985_v13  ;;  %v1494_v46 = vmul.f32 %v1430_v21, %v2987_v34  ;;  %v2989_v60 = vld [vmem:[#allocation24_spill] sm:$0xff]  ;;  %v2996_v21 = vld [vmem:[#allocation26_spill] sm:$0xff] }
 0x272   : > { %2976 = vst [vmem:[#allocation44_spill] sm:$0xff] %v2475_v38  ;;  %2977 = vst [vmem:[#allocation35_spill] sm:$0xff] %v2479_v50  ;;  %v2484_v48 = vmul.f32 %v2979_v33, %v1318_v6  ;;  %1585 = vmatpush1.bf16.msra.mxu1 %v1554_v54  ;;  %922 = vmatprep.subr.bf16.mxu0 %v889_v36  ;;  %v2990_v20 = vunpack.c.h.bf16 %v2983_v53  ;;  %v2993_v14 = vunpack.c.l.bf16 %v2992_v9  ;;  %v2510_v58 = vpop.f32.mrf.mxu0  ;;  %v2998_v2 = vunpack.c.l.bf16 %v2997_v42  ;;  %v2516_v36 = vpop.f32.mrf.mxu1  ;;  %v3001_v0 = vld [vmem:[#allocation21_spill] sm:$0xff]  ;;  %v3014_v34 = vld [vmem:[#allocation20_spill] sm:$0xff] }
 0x273   : > { %2981 = vst [vmem:[#allocation36_spill] sm:$0xff] %v2488_v59  ;;  %2982 = vst [vmem:[#allocation29_spill] sm:$0xff] %v2490_v40  ;;  %v827_v44 = vmul.f32 %v2986_v12, %v2984_v57  ;;  %v888_v8 = vpack.c.bf16 %v832_v27, %v2994_v39  ;;  %1586 = vmatprep.subr.bf16.mxu1 %v1553_v16  ;;  %v1552_v61 = vpack.c.bf16 %v1496_v43, %v1494_v46  ;;  %v3003_v27 = vld [vmem:[#allocation51_spill] sm:$0xff]  ;;  %v3011_v12 = vld [vmem:[#allocation18_spill] sm:$0xff] }
 0x274   : > { %2980 = vst [vmem:[#allocation28_spill] sm:$0xff] %v2484_v48  ;;  %2988 = vst [vmem:[#allocation42_spill] sm:$0xff] %v2499_v37  ;;  %v1491_v3 = vmul.f32 %v2990_v20, %v2989_v60  ;;  %v828_v63 = vmul.f32 %v2993_v14, %v2991_v29  ;;  %v1492_v52 = vmul.f32 %v2998_v2, %v2996_v21  ;;  %v3002_v55 = vunpack.c.l.bf16 %v2985_v13  ;;  %v2522_v54 = vpop.f32.mrf.mxu0  ;;  %v2525_v51 = vpop.f32.mrf.mxu1  ;;  %v3015_v46 = vld [vmem:[#allocation19_spill] sm:$0xff]  ;;  %v3020_v9 = vld [vmem:[#allocation14_spill] sm:$0xff] }
 0x275   : > { %2995 = vst [vmem:[#allocation30_spill] sm:$0xff] %v2510_v58  ;;  %v887_v26 = vpack.c.bf16 %v2999_v18, %v827_v44  ;;  %3000 = vst [vmem:[#allocation31_spill] sm:$0xff] %v2516_v36  ;;  %923 = vmatpush1.bf16.msra.mxu0 %v888_v8  ;;  %v1490_v62 = vmul.f32 %v1426_v35, %v3005_v45  ;;  %v3012_v44 = vld [vmem:[#allocation17_spill] sm:$0xff]  ;;  %v3016_v60 = vpack.c.bf16 %v3014_v34, %v3015_v46  ;;  %v3024_v8 = vld [vmem:[#allocation16_spill] sm:$0xff] }
 0x276   : > { %v826_v32 = vmul.f32 %v3002_v55, %v3001_v0  ;;  %v1551_v15 = vpack.c.bf16 %v3003_v27, %v1491_v3  ;;  %3004 = vst [vmem:[#allocation32_spill] sm:$0xff] %v2522_v54  ;;  %3006 = vst [vmem:[#allocation49_spill] sm:$0xff] %v2525_v51  ;;  %1587 = vmatpush1.bf16.msra.mxu1 %v1552_v61  ;;  %v2527_v43 = vpop.f32.mrf.mxu0  ;;  %v2529_v53 = vpop.f32.mrf.mxu1  ;;  %v3013_v35 = vpack.c.bf16 %v3011_v12, %v3012_v44  ;;  %v3021_v14 = vld [vmem:[#allocation13_spill] sm:$0xff]  ;;  %v3025_v21 = vld [vmem:[#allocation15_spill] sm:$0xff] }
 0x277   : > { %924 = vmatprep.subr.bf16.mxu0 %v887_v26  ;;  %3007 = vst [vmem:[#allocation53_spill] sm:$0xff] %v2527_v43  ;;  %v1550_v33 = vpack.c.bf16 %v1492_v52, %v1490_v62  ;;  %3008 = vst [vmem:[#allocation41_spill] sm:$0xff] %v2529_v53  ;;  %v3026_v42 = vpack.c.bf16 %v3024_v8, %v3025_v21  ;;  %v3027_v2 = vld [vmem:[#allocation10_spill] sm:$0xff]  ;;  %v3028_v52 = vld [vmem:[#allocation9_spill] sm:$0xff] }
 0x278   : > { %v886_v16 = vpack.c.bf16 %v828_v63, %v826_v32  ;;  %1588 = vmatprep.subr.bf16.mxu1 %v1551_v15  ;;  %v2531_v57 = vpop.f32.mrf.mxu0  ;;  %v2533_v13 = vpop.f32.mrf.mxu1  ;;  %v3022_v63 = vpack.c.bf16 %v3020_v9, %v3021_v14  ;;  %v3029_v18 = vpack.c.bf16 %v3027_v2, %v3028_v52  ;;  %v3030_v26 = vld [vmem:[#allocation12_spill] sm:$0xff]  ;;  %v3031_v61 = vld [vmem:[#allocation11_spill] sm:$0xff]  ;;  %v3036_v15 = vld [vmem:[#allocation6_spill] sm:$0xff]  ;;  %3054 = vst [vmem:[#allocation10_spill] sm:$0xff] %v2619_v25 }
 0x279   : > { %3009 = vst [vmem:[#allocation23_spill] sm:$0xff] %v2531_v57  ;;  %3010 = vst [vmem:[#allocation38_spill] sm:$0xff] %v2533_v13  ;;  %v3032_v0 = vpack.c.bf16 %v3030_v26, %v3031_v61  ;;  %v3037_v45 = vld [vmem:[#allocation5_spill] sm:$0xff]  ;;  %v3041_v12 = vld [vmem:[#allocation7_spill] sm:$0xff] }
 0x27a   : > { %925 = vmatpush1.bf16.msra.mxu0 %v886_v16  ;;  %1589 = vmatpush1.bf16.msra.mxu1 %v1550_v33  ;;  %v2541_v20 = vpop.f32.mrf.mxu0  ;;  %v2543_v3 = vpop.f32.mrf.mxu1  ;;  %v3038_v62 = vpack.c.bf16 %v3036_v15, %v3037_v45  ;;  %v3040_v33 = vld [vmem:[#allocation8_spill] sm:$0xff]  ;;  %v2609_v45 = vld [vmem:[#allocation2 + $0xa0] sm:$0xff]  ;;  %3055 = vst [vmem:[#allocation9_spill] sm:$0xff] %v2621_v49  ;;  %3056 = vst [vmem:[#allocation12_spill] sm:$0xff] %v2625_v56 }
 0x27b   : > { %926 = vmatprep.subr.bf16.mxu0 %v3013_v35  ;;  %1590 = vmatprep.subr.bf16.mxu1 %v3016_v60  ;;  %3017 = vst [vmem:[#allocation27_spill] sm:$0xff] %v2541_v20  ;;  %3018 = vst [vmem:[#allocation24_spill] sm:$0xff] %v2543_v3  ;;  %v3042_v44 = vpack.c.bf16 %v3040_v33, %v3041_v12  ;;  %v2615_v12 = vld [vmem:[#allocation2 + $0xa8] sm:$0xff]  ;;  %v2645_v17 = vld [vmem:[#allocation2 + $0xd8] sm:$0xff] }
 0x27c   : > { %v2545_v29 = vpop.f32.mrf.mxu0  ;;  %v2550_v39 = vpop.f32.mrf.mxu1  ;;  %3050 = vst [vmem:[#allocation14_spill] sm:$0xff] %v2609_v45  ;;  %3052 = vst [vmem:[#allocation16_spill] sm:$0xff] %v2615_v12  ;;  %v2647_v6 = vld [vmem:[#allocation2 + $0x1d8] sm:$0xff]  ;;  %v2653_v38 = vld [vmem:[#allocation2 + $0xd0] sm:$0xff]  ;;  %v809_v54 = vunpack.c.h.bf16 %v2645_v17 }
 0x27d   : > { %3019 = vst [vmem:[#allocation25_spill] sm:$0xff] %v2545_v29  ;;  %3023 = vst [vmem:[#allocation39_spill] sm:$0xff] %v2550_v39  ;;  %v753_v22 = vld [vmem:[#allocation2 + $0xf8] sm:$0xff]  ;;  %v752_v51 = vld [vmem:[#allocation2 + $0xf0] sm:$0xff]  ;;  %v1473_v7 = vunpack.c.h.bf16 %v2647_v6 }
 0x27e   : > { %927 = vmatpush1.bf16.msra.mxu0 %v3022_v63  ;;  %1591 = vmatpush1.bf16.msra.mxu1 %v3026_v42  ;;  %v2561_v55 = vpop.f32.mrf.mxu0  ;;  %v2563_v32 = vpop.f32.mrf.mxu1  ;;  %3057 = vst [vmem:[#allocation11_spill] sm:$0xff] %v2627_v41  ;;  %3058 = vst [vmem:[#allocation6_spill] sm:$0xff] %v2635_v5  ;;  %v1417_v47 = vld [vmem:[#allocation2 + $0x1f8] sm:$0xff]  ;;  %v750_v36 = vld [vmem:[#allocation2 + $0xe0] sm:$0xff]  ;;  %v816_v57 = vunpack.c.l.bf16 %v753_v22  ;;  %v815_v37 = vunpack.c.h.bf16 %v752_v51  ;;  %v817_v39 = vunpack.c.h.bf16 %v753_v22  ;;  %v814_v43 = vunpack.c.l.bf16 %v752_v51 }
 0x27f   : > { %928 = vmatprep.subr.bf16.mxu0 %v3029_v18  ;;  %1592 = vmatprep.subr.bf16.mxu1 %v3032_v0  ;;  %3033 = vst [vmem:[#allocation52_spill] sm:$0xff] %v2561_v55  ;;  %3034 = vst [vmem:[#allocation26_spill] sm:$0xff] %v2563_v32  ;;  %v751_v13 = vld [vmem:[#allocation2 + $0xe8] sm:$0xff]  ;;  %v1416_v58 = vld [vmem:[#allocation2 + $0x1f0] sm:$0xff]  ;;  %v1480_v40 = vunpack.c.l.bf16 %v1417_v47  ;;  %v1481_v59 = vunpack.c.h.bf16 %v1417_v47  ;;  %v811_v20 = vunpack.c.h.bf16 %v750_v36 }
 0x280   : > { %v2565_v27 = vpop.f32.mrf.mxu0  ;;  %v2570_v16 = vpop.f32.mrf.mxu1  ;;  %v1415_v50 = vld [vmem:[#allocation2 + $0x1e8] sm:$0xff]  ;;  %v813_v53 = vunpack.c.h.bf16 %v751_v13  ;;  %v1479_v29 = vunpack.c.h.bf16 %v1416_v58  ;;  %v1478_v49 = vunpack.c.l.bf16 %v1416_v58  ;;  %v812_v32 = vunpack.c.l.bf16 %v751_v13 }
 0x281   : > { %3035 = vst [vmem:[#allocation40_spill] sm:$0xff] %v2565_v27  ;;  %3039 = vst [vmem:[#allocation50_spill] sm:$0xff] %v2570_v16  ;;  %v1477_v30 = vunpack.c.h.bf16 %v1415_v50  ;;  %v1414_v16 = vld [vmem:[#allocation2 + $0x1e0] sm:$0xff]  ;;  %v1476_v25 = vunpack.c.l.bf16 %v1415_v50 }
 0x282   : > { %929 = vmatpush1.bf16.msra.mxu0 %v3038_v62  ;;  %1593 = vmatpush1.bf16.msra.mxu1 %v3042_v44  ;;  %v2575_v35 = vpop.f32.mrf.mxu0  ;;  %v2577_v34 = vpop.f32.mrf.mxu1  ;;  %v2611_v62 = vld [vmem:[#allocation2 + $0x1a0] sm:$0xff]  ;;  %v2617_v44 = vld [vmem:[#allocation2 + $0x1a8] sm:$0xff]  ;;  %v1475_v27 = vunpack.c.h.bf16 %v1414_v16  ;;  %v1474_v56 = vunpack.c.l.bf16 %v1414_v16 }
 0x283   : > { %3043 = vst [vmem:[#allocation21_spill] sm:$0xff] %v2575_v35  ;;  %3044 = vst [vmem:[#allocation51_spill] sm:$0xff] %v2577_v34 }
 0x284   : > { %v2579_v46 = vpop.f32.mrf.mxu0  ;;  %v2581_v60 = vpop.f32.mrf.mxu1  ;;  %3051 = vst [vmem:[#allocation13_spill] sm:$0xff] %v2611_v62  ;;  %3053 = vst [vmem:[#allocation15_spill] sm:$0xff] %v2617_v44  ;;  %v810_v44 = vunpack.c.l.bf16 %v750_v36 }
 0x285   : > { %3045 = vst [vmem:[#allocation22_spill] sm:$0xff] %v2579_v46  ;;  %3046 = vst [vmem:[#allocation18_spill] sm:$0xff] %v2581_v60 }
 0x286   : > { %v2583_v9 = vpop.f32.mrf.mxu0  ;;  %v2585_v14 = vpop.f32.mrf.mxu1 }
 0x287   : > { %3047 = vst [vmem:[#allocation17_spill] sm:$0xff] %v2585_v14 }
 0x288   : > { %v2587_v63 = vpop.f32.mrf.mxu0  ;;  %v2589_v8 = vpop.f32.mrf.mxu1 }
 0x289   : > { %3048 = vst [vmem:[#allocation20_spill] sm:$0xff] %v2587_v63  ;;  %3049 = vst [vmem:[#allocation19_spill] sm:$0xff] %v2589_v8 }
 0x28a   : > { %v2591_v21 = vpop.f32.mrf.mxu0  ;;  %v2593_v42 = vpop.f32.mrf.mxu1 }
 0x28c   : > { %v2595_v2 = vpop.f32.mrf.mxu0  ;;  %v2597_v52 = vpop.f32.mrf.mxu1 }
 0x28e   : > { %v2599_v18 = vpop.f32.mrf.mxu0  ;;  %v2601_v26 = vpop.f32.mrf.mxu1 }
 0x290   : > { %v2603_v61 = vpop.f32.mrf.mxu0  ;;  %v2605_v0 = vpop.f32.mrf.mxu1 }
 0x292   : > { %v2607_v15 = vpop.f32.mrf.mxu0  ;;  %v2613_v33 = vpop.f32.mrf.mxu1 }
 0x293   : > { %v875_v63 = vmul.f32 %v811_v20, %v2607_v15  ;;  %v1539_v14 = vmul.f32 %v1475_v27, %v2613_v33  ;;  %v3065_v27 = vunpack.c.h.bf16 %v2639_v4  ;;  %v3076_v15 = vld [vmem:[#allocation52_spill] sm:$0xff] }
 0x294   : > { %v2623_v31 = vpop.f32.mrf.mxu0  ;;  %v2631_v11 = vpop.f32.mrf.mxu1 }
 0x295   : > { %v876_v50 = vmul.f32 %v812_v32, %v2623_v31  ;;  %v804_v31 = vunpack.c.l.bf16 %v2637_v10  ;;  %v802_v32 = vunpack.c.l.bf16 %v2629_v24 }
 0x296   : > { %v709_v1 = vpop.f32.mrf.mxu0  ;;  %v1372_v23 = vpop.f32.mrf.mxu1 }
 0x297   : > { %v877_v46 = vmul.f32 %v813_v53, %v709_v1  ;;  %v1541_v8 = vmul.f32 %v1477_v30, %v1372_v23  ;;  %v873_v1 = vmul.f32 %v809_v54, %v2599_v18  ;;  %v1537_v30 = vmul.f32 %v1473_v7, %v2601_v26  ;;  %v3075_v26 = vld [vmem:[#allocation22_spill] sm:$0xff] }
 0x298   : > { %v713_v28 = vpop.f32.mrf.mxu0  ;;  %v1376_v48 = vpop.f32.mrf.mxu1  ;;  %v3060_v7 = vunpack.c.h.bf16 %v2655_v19 }
 0x299   : > { %v878_v35 = vmul.f32 %v814_v43, %v713_v28  ;;  %v1542_v36 = vmul.f32 %v1478_v49, %v1376_v48  ;;  %v806_v28 = vunpack.c.l.bf16 %v2653_v38  ;;  %v874_v49 = vmul.f32 %v810_v44, %v2603_v61 }
 0x29a   : > { %v715_v62 = vpop.f32.mrf.mxu0  ;;  %v1378_v45 = vpop.f32.mrf.mxu1  ;;  %v1575_v48 = vpack.c.bf16 %v1541_v8, %v1539_v14  ;;  %v1535_v54 = vmul.f32 %v3060_v7, %v2593_v42  ;;  %v3061_v43 = vunpack.c.l.bf16 %v2645_v17  ;;  %v3066_v17 = vld [vmem:[#allocation20_spill] sm:$0xff]  ;;  %v3069_v14 = vld [vmem:[#allocation21_spill] sm:$0xff]  ;;  %v3071_v8 = vld [vmem:[#allocation19_spill] sm:$0xff]  ;;  %v868_v61 = vmul.f32 %v804_v31, %v3075_v26 }
 0x29b   : > { %v879_v34 = vmul.f32 %v815_v37, %v715_v62  ;;  %v1543_v47 = vmul.f32 %v1479_v29, %v1378_v45  ;;  %v911_v37 = vpack.c.bf16 %v877_v46, %v875_v63  ;;  %v910_v20 = vpack.c.bf16 %v876_v50, %v874_v49  ;;  %v3067_v46 = vld [vmem:[#allocation12_spill] sm:$0xff]  ;;  %v3072_v42 = vld [vmem:[#allocation11_spill] sm:$0xff]  ;;  %v3091_v7 = vld [vmem:[#allocation25_spill] sm:$0xff] }
 0x29c   : > { %v717_v3 = vpop.f32.mrf.mxu0  ;;  %v1380_v12 = vpop.f32.mrf.mxu1  ;;  %v872_v53 = vmul.f32 %v3061_v43, %v2595_v2  ;;  %v1464_v2 = vunpack.c.l.bf16 %v3072_v42  ;;  %v3077_v45 = vunpack.c.h.bf16 %v3067_v46  ;;  %v3082_v50 = vld [vmem:[#allocation40_spill] sm:$0xff] }
 0x29d   : > { %v880_v60 = vmul.f32 %v816_v57, %v717_v3  ;;  %v1544_v22 = vmul.f32 %v1480_v40, %v1380_v12  ;;  %v1540_v40 = vmul.f32 %v1476_v25, %v2631_v11  ;;  %v1468_v11 = vunpack.c.l.bf16 %v2639_v4  ;;  %v3073_v4 = vld [vmem:[#allocation51_spill] sm:$0xff] }
 0x29e   : > { %v719_v55 = vpop.f32.mrf.mxu0  ;;  %v1382_v51 = vpop.f32.mrf.mxu1  ;;  %v865_v62 = vmul.f32 %v3077_v45, %v3076_v15  ;;  %v3107_v15 = vld [vmem:[#allocation29_spill] sm:$0xff] }
 0x29f   : > { %v881_v41 = vmul.f32 %v817_v39, %v719_v55  ;;  %v1545_v5 = vmul.f32 %v1481_v59, %v1382_v51  ;;  %v912_v57 = vpack.c.bf16 %v880_v60, %v878_v35  ;;  %v1576_v23 = vpack.c.bf16 %v1544_v22, %v1542_v36  ;;  %v3079_v22 = vld [vmem:[#allocation10_spill] sm:$0xff] }
 0x2a0   : > { %v1538_v59 = vmul.f32 %v1474_v56, %v2605_v0  ;;  %v3063_v56 = vunpack.c.l.bf16 %v2647_v6  ;;  %v870_v35 = vmul.f32 %v806_v28, %v3066_v17  ;;  %v800_v60 = vunpack.c.l.bf16 %v3067_v46  ;;  %v3085_v28 = vld [vmem:[#allocation27_spill] sm:$0xff]  ;;  %v3099_v46 = vld [vmem:[#allocation13_spill] sm:$0xff] }
 0x2a1   : > { %v913_v58 = vpack.c.bf16 %v881_v41, %v879_v34  ;;  %v1577_v13 = vpack.c.bf16 %v1545_v5, %v1543_v47  ;;  %v1470_v5 = vunpack.c.l.bf16 %v2655_v19  ;;  %v3059_v41 = vunpack.c.h.bf16 %v2653_v38  ;;  %v3064_v19 = vld [vmem:[#allocation17_spill] sm:$0xff]  ;;  %v3080_v47 = vld [vmem:[#allocation26_spill] sm:$0xff]  ;;  %v3098_v17 = vld [vmem:[#allocation23_spill] sm:$0xff] }
 0x2a2   : > { %v3062_v38 = vunpack.c.h.bf16 %v2637_v10  ;;  %v1536_v29 = vmul.f32 %v3063_v56, %v2597_v52  ;;  %v1574_v55 = vpack.c.bf16 %v1540_v40, %v1538_v59  ;;  %v1533_v16 = vmul.f32 %v3065_v27, %v3064_v19  ;;  %v3068_v10 = vld [vmem:[#allocation6_spill] sm:$0xff]  ;;  %v3096_v19 = vld [vmem:[#allocation41_spill] sm:$0xff] }
 0x2a3   : > { %930 = vmatprep.subr.bf16.mxu0 %v913_v58  ;;  %1594 = vmatprep.subr.bf16.mxu1 %v1577_v13  ;;  %v871_v25 = vmul.f32 %v3059_v41, %v2591_v21  ;;  %v1573_v34 = vpack.c.bf16 %v1537_v30, %v1535_v54  ;;  %v3070_v6 = vunpack.c.h.bf16 %v2629_v24  ;;  %v1534_v21 = vmul.f32 %v1470_v5, %v3071_v8  ;;  %v3078_v24 = vld [vmem:[#allocation18_spill] sm:$0xff]  ;;  %v3088_v5 = vld [vmem:[#allocation15_spill] sm:$0xff] }
 0x2a4   : > { %931 = vmatpush2.bf16.msra.mxu0 %v912_v57  ;;  %1595 = vmatpush2.bf16.msra.mxu1 %v1576_v23  ;;  %v869_v3 = vmul.f32 %v3062_v38, %v2583_v9  ;;  %v1466_v9 = vunpack.c.l.bf16 %v3068_v10  ;;  %v3074_v52 = vunpack.c.h.bf16 %v3068_v10  ;;  %v908_v0 = vpack.c.bf16 %v872_v53, %v870_v35  ;;  %v3092_v53 = vld [vmem:[#allocation53_spill] sm:$0xff]  ;;  %v3100_v10 = vld [vmem:[#allocation30_spill] sm:$0xff]  ;;  %v3103_v8 = vld [vmem:[#allocation31_spill] sm:$0xff] }
 0x2a5   : > { %932 = vmatprep.subr.bf16.mxu0 %v911_v37  ;;  %1596 = vmatprep.subr.bf16.mxu1 %v1575_v48  ;;  %v909_v39 = vpack.c.bf16 %v873_v1, %v871_v25  ;;  %v867_v63 = vmul.f32 %v3070_v6, %v3069_v14  ;;  %v1532_v33 = vmul.f32 %v1468_v11, %v3078_v24  ;;  %v798_v51 = vunpack.c.l.bf16 %v3079_v22  ;;  %v3083_v1 = vld [vmem:[#allocation16_spill] sm:$0xff]  ;;  %v3084_v37 = vld [vmem:[#allocation9_spill] sm:$0xff]  ;;  %v3087_v48 = vld [vmem:[#allocation50_spill] sm:$0xff] }
 0x2a6   : > { %v1531_v18 = vmul.f32 %v3074_v52, %v3073_v4  ;;  %v1572_v44 = vpack.c.bf16 %v1536_v29, %v1534_v21  ;;  %v3081_v36 = vunpack.c.h.bf16 %v3072_v42  ;;  %v866_v57 = vmul.f32 %v802_v32, %v3082_v50  ;;  %v3089_v25 = vld [vmem:[#allocation24_spill] sm:$0xff]  ;;  %v3102_v6 = vld [vmem:[#allocation38_spill] sm:$0xff] }
 0x2a7   : > { %v907_v12 = vpack.c.bf16 %v869_v3, %v867_v63  ;;  %v796_v40 = vunpack.c.l.bf16 %v3083_v1  ;;  %v1462_v23 = vunpack.c.l.bf16 %v3084_v37  ;;  %v3086_v30 = vunpack.c.h.bf16 %v3079_v22  ;;  %v3094_v3 = vld [vmem:[#allocation39_spill] sm:$0xff]  ;;  %v3108_v24 = vld [vmem:[#allocation42_spill] sm:$0xff] }
 0x2a8   : > { %933 = vmatpush2.bf16.msra.mxu0 %v910_v20  ;;  %1597 = vmatpush2.bf16.msra.mxu1 %v1574_v55  ;;  %v1529_v58 = vmul.f32 %v3081_v36, %v3080_v47  ;;  %v1571_v13 = vpack.c.bf16 %v1533_v16, %v1531_v18  ;;  %v1530_v31 = vmul.f32 %v1466_v9, %v3087_v48  ;;  %v1460_v41 = vunpack.c.l.bf16 %v3088_v5  ;;  %v3095_v55 = vld [vmem:[#allocation14_spill] sm:$0xff]  ;;  %v3106_v18 = vld [vmem:[#allocation49_spill] sm:$0xff]  ;;  %v3109_v22 = vld [vmem:[#allocation35_spill] sm:$0xff] }
 0x2a9   : > { %934 = vmatprep.subr.bf16.mxu0 %v909_v39  ;;  %1598 = vmatprep.subr.bf16.mxu1 %v1573_v34  ;;  %v863_v49 = vmul.f32 %v3086_v30, %v3085_v28  ;;  %v3090_v59 = vunpack.c.h.bf16 %v3084_v37  ;;  %v864_v54 = vmul.f32 %v800_v60, %v3091_v7  ;;  %v906_v43 = vpack.c.bf16 %v868_v61, %v866_v57  ;;  %v3112_v36 = vld [vmem:[#allocation36_spill] sm:$0xff]  ;;  %v3115_v57 = vld [vmem:[#allocation43_spill] sm:$0xff]  ;;  %v3119_v37 = vld [vmem:[#allocation37_spill] sm:$0xff] }
 0x2aa   : > { %v3093_v20 = vunpack.c.h.bf16 %v3083_v1  ;;  %v1528_v56 = vmul.f32 %v1464_v2, %v3094_v3  ;;  %v1570_v39 = vpack.c.bf16 %v1532_v33, %v1530_v31  ;;  %v794_v32 = vunpack.c.l.bf16 %v3095_v55  ;;  %v3105_v2 = vld [vmem:[#allocation32_spill] sm:$0xff]  ;;  %v3121_v28 = vld [vmem:[#allocation55_spill] sm:$0xff]  ;;  %v3122_v30 = vld [vmem:[#allocation54_spill] sm:$0xff] }
 0x2ab   : > { %v1527_v11 = vmul.f32 %v3090_v59, %v3089_v25  ;;  %v905_v29 = vpack.c.bf16 %v865_v62, %v863_v49  ;;  %v3097_v27 = vunpack.c.h.bf16 %v3088_v5  ;;  %v862_v35 = vmul.f32 %v798_v51, %v3098_v17  ;;  %v3110_v51 = vld [vmem:[#allocation44_spill] sm:$0xff]  ;;  %v3124_v48 = vld [vmem:[#allocation57_spill] sm:$0xff] }
 0x2ac   : > { %935 = vmatpush2.bf16.msra.mxu0 %v908_v0  ;;  %1599 = vmatpush2.bf16.msra.mxu1 %v1572_v44  ;;  %v861_v38 = vmul.f32 %v3093_v20, %v3092_v53  ;;  %v1458_v60 = vunpack.c.l.bf16 %v3099_v46  ;;  %v3101_v9 = vunpack.c.h.bf16 %v3095_v55  ;;  %v1526_v63 = vmul.f32 %v1462_v23, %v3102_v6  ;;  %v3125_v31 = vld [vmem:[#allocation56_spill] sm:$0xff]  ;;  %v3127_v59 = vld [vmem:[#allocation45_spill] sm:$0xff] }
 0x2ad   : > { %936 = vmatprep.subr.bf16.mxu0 %v907_v12  ;;  %1600 = vmatprep.subr.bf16.mxu1 %v1571_v13  ;;  %v1525_v16 = vmul.f32 %v3097_v27, %v3096_v19  ;;  %v1569_v34 = vpack.c.bf16 %v1529_v58, %v1527_v11  ;;  %v3104_v21 = vunpack.c.h.bf16 %v3099_v46  ;;  %v860_v4 = vmul.f32 %v796_v40, %v3105_v2  ;;  %v3113_v58 = vld [vmem:[#allocation28_spill] sm:$0xff]  ;;  %v3116_v13 = vld [vmem:[#allocation33_spill] sm:$0xff]  ;;  %v3118_v40 = vld [vmem:[#allocation34_spill] sm:$0xff] }
 0x2ae   : > { %v859_v14 = vmul.f32 %v3101_v9, %v3100_v10  ;;  %v904_v52 = vpack.c.bf16 %v864_v54, %v862_v35  ;;  %v1524_v26 = vmul.f32 %v1460_v41, %v3106_v18  ;;  %v1568_v0 = vpack.c.bf16 %v1528_v56, %v1526_v63  ;;  %v1798_v41 = vld [vmem:[%s1919_s13] sm:$0xff]  ;;  %v3128_v11 = vld [vmem:[#allocation48_spill] sm:$0xff]  ;;  %v3130_v54 = vld [vmem:[#allocation47_spill] sm:$0xff] }
 0x2af   : > { %v1523_v42 = vmul.f32 %v3104_v21, %v3103_v8  ;;  %v858_v45 = vmul.f32 %v794_v32, %v3107_v15  ;;  %v1522_v33 = vmul.f32 %v1458_v60, %v3108_v24  ;;  %v3111_v47 = vpack.c.bf16 %v3109_v22, %v3110_v51 }
 0x2b0   : > { %937 = vmatpush2.bf16.msra.mxu0 %v906_v43  ;;  %1601 = vmatpush2.bf16.msra.mxu1 %v1570_v39  ;;  %v903_v61 = vpack.c.bf16 %v861_v38, %v859_v14  ;;  %v3114_v50 = vpack.c.bf16 %v3112_v36, %v3113_v58  ;;  %v3117_v1 = vpack.c.bf16 %v3115_v57, %v3116_v13  ;;  %v3131_v43 = vld [vmem:[#allocation46_spill] sm:$0xff] }
 0x2b1   : > { %938 = vmatprep.subr.bf16.mxu0 %v905_v29  ;;  %1602 = vmatprep.subr.bf16.mxu1 %v1569_v34  ;;  %v1567_v62 = vpack.c.bf16 %v1525_v16, %v1523_v42  ;;  %v902_v12 = vpack.c.bf16 %v860_v4, %v858_v45  ;;  %v1566_v44 = vpack.c.bf16 %v1524_v26, %v1522_v33 }
 0x2b2   : > { %v3120_v23 = vpack.c.bf16 %v3118_v40, %v3119_v37  ;;  %v3123_v49 = vpack.c.bf16 %v3121_v28, %v3122_v30  ;;  %v3126_v5 = vpack.c.bf16 %v3124_v48, %v3125_v31  ;;  %v293_v25 = vpack.c.bf16 %v1798_v41, %v1798_v41 }
 0x2b3   : > { %v3129_v7 = vpack.c.bf16 %v3127_v59, %v3128_v11  ;;  %v3132_v53 = vpack.c.bf16 %v3130_v54, %v3131_v43 }
 0x2b4   : > { %939 = vmatpush2.bf16.msra.mxu0 %v904_v52  ;;  %1603 = vmatpush2.bf16.msra.mxu1 %v1568_v0 }
 0x2b5   : > { %940 = vmatprep.subr.bf16.mxu0 %v903_v61  ;;  %1604 = vmatprep.subr.bf16.mxu1 %v1567_v62 }
 0x2b8   : > { %941 = vmatpush2.bf16.msra.mxu0 %v902_v12  ;;  %1605 = vmatpush2.bf16.msra.mxu1 %v1566_v44 }
 0x2b9   : > { %942 = vmatprep.subr.bf16.mxu0 %v3111_v47  ;;  %1606 = vmatprep.subr.bf16.mxu1 %v3114_v50 }
 0x2bc   : > { %943 = vmatpush2.bf16.msra.mxu0 %v3117_v1  ;;  %1607 = vmatpush2.bf16.msra.mxu1 %v3120_v23 }
 0x2bd   : > { %944 = vmatprep.subr.bf16.mxu0 %v3123_v49  ;;  %1608 = vmatprep.subr.bf16.mxu1 %v3126_v5 }
 0x2c0   : > { %945 = vmatpush2.bf16.msra.mxu0 %v3129_v7  ;;  %1609 = vmatpush2.bf16.msra.mxu1 %v3132_v53 }
 0x2c3   : > { %947 = vmatmul.mubr.bf16.vlgmr.msra.gmra.mxu0 %v293_v25  ;;  %1611 = vmatmul.mubr.bf16.vlgmr.msra.gmra.mxu1 %v293_v25 }
 0x383   : > { %v948_v20 = vpop.f32.mrf.mxu0  ;;  %v1612_v38 = vpop.f32.mrf.mxu1 }
 0x384   : > { %955 = vst [vmem:[%s286_s16] sm:$0xf] %v948_v20  ;;  %v1621_v3 = vrot.slane %v1612_v38, 4 }
 0x385   : > { %v950_v56 = vpop.f32.mrf.mxu0  ;;  %v1614_v29 = vpop.f32.mrf.mxu1 }
 0x386   : > { %956 = vst [vmem:[%s286_s16 + $0x8] sm:$0xf] %v950_v56  ;;  %1625 = vst [vmem:[%s286_s16] sm:$0xf0] %v1621_v3  ;;  %v1622_v39 = vrot.slane %v1614_v29, 4 }
 0x387   : > { %v952_v55 = vpop.f32.mrf.mxu0  ;;  %v1616_v32 = vpop.f32.mrf.mxu1 }
 0x388   : > { %1626 = vst [vmem:[%s286_s16 + $0x8] sm:$0xf0] %v1622_v39 }
 0x389   : > { %v953_v19 = vpop.f32.mrf.mxu0  ;;  %v1617_v27 = vpop.f32.mrf.mxu1 }
 0x38a PF: > { %s17_s21 = sadd.s32 1, %s1835_s21  }
 0x38b   : > { %p14_p1 = scmp.ge.s32.totalorder %s17_s21, 4  }
 0x38d   :  { %16 = sbr.rel (!%p14_p1) target bundleno = 1 (0x1), region = 90 }
 0x392   :  { %1648 = vsyncpa [#allocation3], 1 }
 0x393   :  { %1650 = vsyncpa [#allocation3 + $0x1], 1 }

</bundles_post_ra>
